<compile_context>
chip_gen: v7x
topology: tpu7x:2x2x1
jax: 0.10.0
libtpu: 0.0.40
codegen_flags: <defaults>
</compile_context>

<pallas_src>
import jax
import jax.numpy as jnp
from jax import lax
from jax.experimental import pallas as pl
from jax.experimental.pallas import tpu as pltpu

MXU_DTYPE = jnp.bfloat16        # MXU operand dtype (accumulation stays f32)
BN_EPS = 1e-5
TARGET_TILE_ROWS = 512          # 512-1024 measured near HBM roofline; VMEM-safe


def _pick_tile_rows(m, target=TARGET_TILE_ROWS):
    """Largest row tile <= target that is a multiple of 8 (sublane constraint)."""
    tm = min(int(target), int(m))
    return max(8, (tm // 8) * 8)


def _pad_rows(a, m_padded):
    m = a.shape[0]
    if m_padded == m:
        return a
    pads = ((0, m_padded - m),) + ((0, 0),) * (a.ndim - 1)
    return jnp.pad(a, pads)


def _vmem_limit_bytes(block_shapes, scratch_shapes=()):
    """Scoped-VMEM request derived from actual (lane/sublane-padded, double-buffered)
    block bytes, clamped to [16 MiB, 64 MiB] so v7x's smaller VMEM is not crowded."""
    def padded_bytes(shape):
        shape = tuple(int(d) for d in shape)
        lead = 1
        for d in shape[:-2]:
            lead *= d
        sub = -(-shape[-2] // 8) * 8
        lane = -(-shape[-1] // 128) * 128
        return lead * sub * lane * 4          # 4 B/elem upper bound (covers bf16 tiles)

    total = sum(2 * padded_bytes(s) for s in block_shapes)      # double-buffered I/O
    total += sum(padded_bytes(s) for s in scratch_shapes)
    total += 2 * 1024 * 1024                                    # compiler headroom
    return int(min(max(total, 16 * 1024 * 1024), 64 * 1024 * 1024))


# ----------------------------------------------------------------------------
# Fused per-stage Pallas kernel: SparseConv2d + SparseBatchNorm2d + ReLU
# ----------------------------------------------------------------------------
def _make_stage_kernel(eps):
    def kernel(p_ref, w_ref, m_ref, prm_ref, o_ref, s_ref):
        # p_ref:   (tm, K)  bf16 im2col patches        w_ref: (K, C) bf16 conv weight
        # m_ref:   (tm, 1)  f32 active mask            prm_ref: (2, C) f32 [gamma; beta]
        # o_ref:   (tm, C)  f32 final stage output
        # s_ref:   (8, C)   f32 resident scratch: row0 sum, row1 sumsq, row2 count
        phase = pl.program_id(0)          # 0: masked-stats pass, 1: BN-apply pass
        step = pl.program_id(1)

        # SparseConv2d GEMM (bf16 MXU operands, f32 accumulate).  The conv bias is
        # intentionally NOT applied: training-mode BN subtracts the per-channel
        # mean of this same tensor, which cancels any per-channel constant exactly.
        y = jnp.dot(p_ref[...], w_ref[...], preferred_element_type=jnp.float32)
        m = m_ref[...]                    # (tm, 1), zeros on inactive / padded rows

        @pl.when((phase == 0) & (step == 0))
        def _init():
            s_ref[...] = jnp.zeros_like(s_ref)

        @pl.when(phase == 0)
        def _stats():
            ym = y * m                    # zero inactive rows for the statistics
            s_ref[0:1, :] = s_ref[0:1, :] + jnp.sum(ym, axis=0, keepdims=True)
            s_ref[1:2, :] = s_ref[1:2, :] + jnp.sum(ym * ym, axis=0, keepdims=True)
            s_ref[2:3, :] = s_ref[2:3, :] + jnp.sum(m)      # active count (broadcast)

        @pl.when(phase == 1)
        def _apply():
            # Tiny (1, C) per-channel math, recomputed per tile (EUP/VPU are idle).
            n = jnp.maximum(s_ref[2:3, :], 1.0)             # guard all-inactive
            mean = s_ref[0:1, :] / n
            var = jnp.maximum(s_ref[1:2, :] / n - mean * mean, 0.0)
            scale = prm_ref[0:1, :] * lax.rsqrt(var + eps)
            shift = prm_ref[1:2, :] - mean * scale
            # BN epilogue + ReLU + sparsity scatter-back (inactive -> exact zero)
            o_ref[...] = jnp.maximum(y * scale + shift, 0.0) * m

    return kernel


def sparse_conv_bn_relu(patches, w, mask, prm, *, tile_rows, eps=BN_EPS):
    """patches: (Mp, K) bf16, w: (K, C) bf16, mask: (Mp, 1) f32, prm: (2, C) f32
    -> (Mp, C) f32 masked BN+ReLU output."""
    mp, k = patches.shape
    c = w.shape[1]
    n_tiles = mp // tile_rows
    vmem_limit = _vmem_limit_bytes(
        [(tile_rows, k), (k, c), (tile_rows, 1), (2, c), (tile_rows, c)],
        scratch_shapes=[(8, c)])

    return pl.pallas_call(
        _make_stage_kernel(eps),
        out_shape=jax.ShapeDtypeStruct((mp, c), jnp.float32),
        grid=(2, n_tiles),                       # (phase, row tile)
        in_specs=[
            pl.BlockSpec((tile_rows, k), lambda p, i: (i, 0)),   # im2col patches
            pl.BlockSpec((k, c), lambda p, i: (0, 0)),           # conv weight (invariant)
            pl.BlockSpec((tile_rows, 1), lambda p, i: (i, 0)),   # active mask
            pl.BlockSpec((2, c), lambda p, i: (0, 0)),           # [gamma; beta] (invariant)
        ],
        # Phase 0 keeps the output block resident (never written back); phase 1
        # visits each block once, consecutively -> single final writeback per block.
        out_specs=pl.BlockSpec((tile_rows, c), lambda p, i: (p * i, 0)),
        scratch_shapes=[pltpu.VMEM((8, c), jnp.float32)],        # resident BN stats
        compiler_params=pltpu.CompilerParams(
            dimension_semantics=("arbitrary", "arbitrary"),      # phase order + stats acc
            vmem_limit_bytes=vmem_limit),
    )(patches, w, mask, prm)


# ----------------------------------------------------------------------------
# Glue (plain JAX): im2col, mask up-sampling, layout plumbing
# ----------------------------------------------------------------------------
def im2col_nhwc(x, k, stride, pad):
    """x: (B, H, W, C) -> patches (B, Ho, Wo, k*k*C), tap order (kh, kw, c)."""
    # TODO(synk): replace with in-kernel halo DMA + per-tap GEMMs (see header).
    x_p = jnp.pad(x, ((0, 0), (pad, pad), (pad, pad), (0, 0)))
    _, hp, wp, _ = x_p.shape
    ho = (hp - k) // stride + 1
    wo = (wp - k) // stride + 1
    cols = []
    for i in range(k):
        for j in range(k):
            cols.append(x_p[:, i:i + stride * ho:stride, j:j + stride * wo:stride, :])
    return jnp.concatenate(cols, axis=-1), ho, wo


def upsample_mask(cur_active, h, w):
    """_get_active_ex_or_ii: repeat_interleave the (B,1,fh,fw) mask up to (B,1,h,w)."""
    m = jnp.repeat(cur_active, h // cur_active.shape[2], axis=2)
    m = jnp.repeat(m, w // cur_active.shape[3], axis=3)
    return m


# ----------------------------------------------------------------------------
# SparseEncoder forward (hierarchical=True)
# ----------------------------------------------------------------------------
def sparse_encoder_forward(x_nchw, params, cur_active, *, stage_cfgs):
    """Returns the list of hierarchical feature maps (NCHW), sparsity-masked.

    stage_cfgs: static tuple of (k, stride, pad) per stage (kept out of tracing).
    """
    # NCHW -> NHWC once; bf16 cast upstream of the im2col amplification.
    x = jnp.transpose(x_nchw, (0, 2, 3, 1)).astype(MXU_DTYPE)
    feats = []
    for stage, (k, stride, pad) in zip(params["stages"], stage_cfgs):
        w = stage["w"].astype(MXU_DTYPE)                                  # (K, Cout)
        prm = jnp.concatenate([stage["gamma"], stage["beta"]], axis=0)    # (2, Cout)
        # stage["b"] (conv bias) is skipped on purpose: training-mode BN mean
        # subtraction cancels it exactly, so the final features are identical.

        patches, ho, wo = im2col_nhwc(x, k, stride, pad)
        b = patches.shape[0]
        kdim = patches.shape[-1]
        cout = w.shape[-1]
        m_rows = b * ho * wo

        mask4d = upsample_mask(cur_active, ho, wo)                        # (B,1,Ho,Wo)
        mask = jnp.transpose(mask4d, (0, 2, 3, 1)).reshape(m_rows, 1)
        mask = mask.astype(jnp.float32)

        tm = _pick_tile_rows(m_rows)
        m_padded = ((m_rows + tm - 1) // tm) * tm

        p_flat = _pad_rows(patches.reshape(m_rows, kdim), m_padded)       # bf16 already
        mask_p = _pad_rows(mask, m_padded)                                # padded rows inactive

        out = sparse_conv_bn_relu(p_flat, w, mask_p, prm, tile_rows=tm)[:m_rows]

        x_f32 = out.reshape(b, ho, wo, cout)                              # NHWC f32
        feats.append(jnp.transpose(x_f32, (0, 3, 1, 2)))                  # store NCHW
        x = x_f32.astype(MXU_DTYPE)                                       # bf16 for next stage
    return feats


# ----------------------------------------------------------------------------
# Pure-JAX f32 reference (original PyTorch semantics, conv bias included)
# ----------------------------------------------------------------------------
def _reference_forward(x_nchw, params, cur_active, stage_cfgs):
    x = x_nchw
    feats = []
    for stage, (k, stride, pad) in zip(params["stages"], stage_cfgs):
        cin = x.shape[1]
        cout = stage["w"].shape[-1]
        w4 = stage["w"].reshape(k, k, cin, cout)                          # HWIO
        y = lax.conv_general_dilated(
            x, w4, (stride, stride), ((pad, pad), (pad, pad)),
            dimension_numbers=("NCHW", "HWIO", "NCHW"))
        y = y + stage["b"].reshape(1, cout, 1, 1)
        mask = upsample_mask(cur_active, y.shape[2], y.shape[3])          # (B,1,Ho,Wo)
        y = y * mask                                                      # sp_conv_forward
        bhwc = jnp.transpose(y, (0, 2, 3, 1))
        yflat = bhwc.reshape(-1, cout)
        mflat = jnp.transpose(mask, (0, 2, 3, 1)).reshape(-1, 1)
        n = jnp.maximum(jnp.sum(mflat), 1.0)
        mean = jnp.sum(yflat * mflat, axis=0, keepdims=True) / n
        var = jnp.sum(((yflat - mean) ** 2) * mflat, axis=0, keepdims=True) / n
        ynorm = (yflat - mean) * lax.rsqrt(var + BN_EPS) * stage["gamma"] + stage["beta"]
        out = jnp.maximum(ynorm, 0.0) * mflat                             # ReLU + re-mask
        x = jnp.transpose(out.reshape(bhwc.shape), (0, 3, 1, 2))
        feats.append(x)
    return feats


# ----------------------------------------------------------------------------
# Deterministic parameter construction (synthetic backbone)
# ----------------------------------------------------------------------------
def make_params(key, cin, channels, k=3, stride=2, pad=1):
    stages, cfgs = [], []
    for cout in channels:
        key, k1, k2 = jax.random.split(key, 3)
        w = jax.random.normal(k1, (k, k, cin, cout), jnp.float32) * 0.1   # (kh,kw,cin,cout)
        w = w.reshape(k * k * cin, cout)
        bias = jax.random.normal(k2, (1, cout), jnp.float32) * 0.01       # cancelled by BN
        gamma = jnp.ones((1, cout), jnp.float32)
        beta = jnp.zeros((1, cout), jnp.float32)
        stages.append(dict(w=w, b=bias, gamma=gamma, beta=beta))
        cfgs.append((k, stride, pad))
        cin = cout
    return {"stages": stages}, tuple(cfgs)


if __name__ == "__main__":
    key = jax.random.PRNGKey(0)
    k_x, k_p = jax.random.split(key)

    B, Cin, S = 2, 4, 16
    downsample_ratio = 4
    channels = [8, 16]

    x = jax.random.normal(k_x, (B, Cin, S, S), jnp.float32)               # NCHW input
    params, stage_cfgs = make_params(k_p, Cin, channels)

    # _cur_active: (B, 1, S//ratio, S//ratio) binary mask; deterministic checkerboard
    fh = fw = S // downsample_ratio
    rows = jnp.arange(fh)[:, None]
    cols = jnp.arange(fw)[None, :]
    cur_active = ((rows + cols) % 2 == 0).astype(jnp.float32)
    cur_active = jnp.broadcast_to(cur_active, (B, 1, fh, fw))

    fwd = jax.jit(sparse_encoder_forward, static_argnames=("stage_cfgs",))
    feats = fwd(x, params, cur_active, stage_cfgs=stage_cfgs)
    feats = jax.block_until_ready(feats)

    assert feats[0].shape == (B, channels[0], S // 2, S // 2)
    assert feats[1].shape == (B, channels[1], S // 4, S // 4)
    assert all(bool(jnp.all(jnp.isfinite(f))) for f in feats)

    # inactive positions must be exactly zero in every hierarchical feature map
    for f in feats:
        m = upsample_mask(cur_active, f.shape[2], f.shape[3])
        assert bool(jnp.all(jnp.where(m == 0, f, 0.0) == 0.0))

    # compare against the f32 reference (bf16 MXU operands -> modest tolerance)
    ref_feats = _reference_forward(x, params, cur_active, stage_cfgs)
    for f, r in zip(feats, ref_feats):
        err = float(jnp.max(jnp.abs(f - r)))
        assert err < 0.1, f"mismatch vs pure-JAX reference: max abs err {err}"

    print("KERNEL_OK")
</pallas_src>

<mosaic_0001>
module attributes {stable_mosaic.version = 11 : i64} {
  func.func @kernel(%arg0: i32, %arg1: i32, %arg2: memref<128x36xbf16, #tpu.memory_space<vmem>>, %arg3: memref<36x8xbf16, #tpu.memory_space<vmem>>, %arg4: memref<128x1xf32, #tpu.memory_space<vmem>>, %arg5: memref<2x8xf32, #tpu.memory_space<vmem>>, %arg6: memref<128x8xf32, #tpu.memory_space<vmem>>, %arg7: memref<8x8xf32, #tpu.memory_space<vmem>>) attributes {dimension_semantics = [#tpu.dimension_semantics<arbitrary>, #tpu.dimension_semantics<arbitrary>], iteration_bounds = array<i64: 2, 1>, scalar_prefetch = 0 : i64, scratch_operands = 1 : i64, tpu.core_type = #tpu.core_type<tc>, window_params = [{transform_indices = @transform_0, window_bounds = array<i64: 128, 36>}, {pipeline_mode = #tpu.pipeline_mode<synchronous>, transform_indices = @transform_1, window_bounds = array<i64: 36, 8>}, {transform_indices = @transform_2, window_bounds = array<i64: 128, 1>}, {pipeline_mode = #tpu.pipeline_mode<synchronous>, transform_indices = @transform_3, window_bounds = array<i64: 2, 8>}, {transform_indices = @transform_4, window_bounds = array<i64: 128, 8>}]} {
    %c0 = arith.constant 0 : index
    %c0_0 = arith.constant 0 : index
    %0 = vector.load %arg2[%c0, %c0_0] : memref<128x36xbf16, #tpu.memory_space<vmem>>, vector<128x36xbf16>
    %c0_1 = arith.constant 0 : index
    %c0_2 = arith.constant 0 : index
    %1 = vector.load %arg3[%c0_1, %c0_2] : memref<36x8xbf16, #tpu.memory_space<vmem>>, vector<36x8xbf16>
    %cst = arith.constant dense<0.000000e+00> : vector<128x8xf32>
    %2 = tpu.matmul %0, %1, %cst {dimension_numbers = #tpu.dot_dimension_numbers<[1], [0], [0], [1], [0, 0, 1, 1], [], []>} : vector<128x36xbf16>, vector<36x8xbf16>, vector<128x8xf32> -> vector<128x8xf32>
    %c0_3 = arith.constant 0 : index
    %c0_4 = arith.constant 0 : index
    %3 = vector.load %arg4[%c0_3, %c0_4] : memref<128x1xf32, #tpu.memory_space<vmem>>, vector<128x1xf32>
    %c0_i32 = arith.constant 0 : i32
    %4 = arith.cmpi eq, %arg0, %c0_i32 : i32
    %c0_i32_5 = arith.constant 0 : i32
    %5 = arith.cmpi eq, %arg1, %c0_i32_5 : i32
    %6 = arith.andi %4, %5 : i1
    %7 = arith.extui %6 : i1 to i32
    %c0_i32_6 = arith.constant 0 : i32
    %8 = arith.cmpi ne, %7, %c0_i32_6 : i32
    scf.if %8 {
      %cst_10 = arith.constant 0.000000e+00 : f32
      %15 = vector.broadcast %cst_10 : f32 to vector<8x8xf32>
      %c0_11 = arith.constant 0 : index
      %c0_12 = arith.constant 0 : index
      %16 = vector.load %arg7[%c0_11, %c0_12] : memref<8x8xf32, #tpu.memory_space<vmem>>, vector<8x8xf32>
      tpu.vector_store %arg7[%c0_11, %c0_12], %15 {strides = array<i32>} : memref<8x8xf32, #tpu.memory_space<vmem>>, vector<8x8xf32>,
    } else {
    }
    %c0_i32_7 = arith.constant 0 : i32
    %9 = arith.cmpi eq, %arg0, %c0_i32_7 : i32
    %10 = arith.extui %9 : i1 to i32
    %c0_i32_8 = arith.constant 0 : i32
    %11 = arith.cmpi ne, %10, %c0_i32_8 : i32
    scf.if %11 {
      %15 = vector.broadcast %3 : vector<128x1xf32> to vector<128x8xf32>
      %16 = arith.mulf %2, %15 : vector<128x8xf32>
      %c0_10 = arith.constant 0 : index
      %c0_11 = arith.constant 0 : index
      %17 = vector.load %arg7[%c0_10, %c0_11] : memref<8x8xf32, #tpu.memory_space<vmem>>, vector<1x8xf32>
      %cst_12 = arith.constant dense<0.000000e+00> : vector<8xf32>
      %18 = vector.multi_reduction <add>, %16, %cst_12 [0] : vector<128x8xf32> to vector<8xf32>
      %19 = vector.shape_cast %18 : vector<8xf32> to vector<1x8xf32>
      %20 = arith.addf %17, %19 : vector<1x8xf32>
      %c0_13 = arith.constant 0 : index
      %c0_14 = arith.constant 0 : index
      %21 = vector.load %arg7[%c0_13, %c0_14] : memref<8x8xf32, #tpu.memory_space<vmem>>, vector<1x8xf32>
      tpu.vector_store %arg7[%c0_13, %c0_14], %20 {strides = array<i32>} : memref<8x8xf32, #tpu.memory_space<vmem>>, vector<1x8xf32>,
      %c1 = arith.constant 1 : index
      %c0_15 = arith.constant 0 : index
      %22 = vector.load %arg7[%c1, %c0_15] : memref<8x8xf32, #tpu.memory_space<vmem>>, vector<1x8xf32>
      %23 = arith.mulf %16, %16 : vector<128x8xf32>
      %cst_16 = arith.constant dense<0.000000e+00> : vector<8xf32>
      %24 = vector.multi_reduction <add>, %23, %cst_16 [0] : vector<128x8xf32> to vector<8xf32>
      %25 = vector.shape_cast %24 : vector<8xf32> to vector<1x8xf32>
      %26 = arith.addf %22, %25 : vector<1x8xf32>
      %c1_17 = arith.constant 1 : index
      %c0_18 = arith.constant 0 : index
      %27 = vector.load %arg7[%c1_17, %c0_18] : memref<8x8xf32, #tpu.memory_space<vmem>>, vector<1x8xf32>
      tpu.vector_store %arg7[%c1_17, %c0_18], %26 {strides = array<i32>} : memref<8x8xf32, #tpu.memory_space<vmem>>, vector<1x8xf32>,
      %c2 = arith.constant 2 : index
      %c0_19 = arith.constant 0 : index
      %28 = vector.load %arg7[%c2, %c0_19] : memref<8x8xf32, #tpu.memory_space<vmem>>, vector<1x8xf32>
      %29 = vector.shape_cast %3 : vector<128x1xf32> to vector<1x128x1xf32>
      %cst_20 = arith.constant dense<0.000000e+00> : vector<1xf32>
      %30 = vector.multi_reduction <add>, %29, %cst_20 [1, 2] : vector<1x128x1xf32> to vector<1xf32>
      %31 = vector.shape_cast %30 : vector<1xf32> to vector<1x1x1xf32>
      %32 = vector.extract %31[0, 0, 0] : f32 from vector<1x1x1xf32>
      %33 = vector.broadcast %32 : f32 to vector<1x8xf32>
      %34 = arith.addf %28, %33 : vector<1x8xf32>
      %c2_21 = arith.constant 2 : index
      %c0_22 = arith.constant 0 : index
      %35 = vector.load %arg7[%c2_21, %c0_22] : memref<8x8xf32, #tpu.memory_space<vmem>>, vector<1x8xf32>
      tpu.vector_store %arg7[%c2_21, %c0_22], %34 {strides = array<i32>} : memref<8x8xf32, #tpu.memory_space<vmem>>, vector<1x8xf32>,
    } else {
    }
    %c1_i32 = arith.constant 1 : i32
    %12 = arith.cmpi eq, %arg0, %c1_i32 : i32
    %13 = arith.extui %12 : i1 to i32
    %c0_i32_9 = arith.constant 0 : i32
    %14 = arith.cmpi ne, %13, %c0_i32_9 : i32
    scf.if %14 {
      %c2 = arith.constant 2 : index
      %c0_10 = arith.constant 0 : index
      %15 = vector.load %arg7[%c2, %c0_10] : memref<8x8xf32, #tpu.memory_space<vmem>>, vector<1x8xf32>
      %cst_11 = arith.constant 1.000000e+00 : f32
      %16 = vector.broadcast %cst_11 : f32 to vector<1x8xf32>
      %17 = arith.maximumf %15, %16 : vector<1x8xf32>
      %c0_12 = arith.constant 0 : index
      %c0_13 = arith.constant 0 : index
      %18 = vector.load %arg7[%c0_12, %c0_13] : memref<8x8xf32, #tpu.memory_space<vmem>>, vector<1x8xf32>
      %19 = arith.divf %18, %17 : vector<1x8xf32>
      %c1 = arith.constant 1 : index
      %c0_14 = arith.constant 0 : index
      %20 = vector.load %arg7[%c1, %c0_14] : memref<8x8xf32, #tpu.memory_space<vmem>>, vector<1x8xf32>
      %21 = arith.divf %20, %17 : vector<1x8xf32>
      %22 = arith.mulf %19, %19 : vector<1x8xf32>
      %23 = arith.subf %21, %22 : vector<1x8xf32>
      %cst_15 = arith.constant 0.000000e+00 : f32
      %24 = vector.broadcast %cst_15 : f32 to vector<1x8xf32>
      %25 = arith.maximumf %23, %24 : vector<1x8xf32>
      %c0_16 = arith.constant 0 : index
      %c0_17 = arith.constant 0 : index
      %26 = vector.load %arg5[%c0_16, %c0_17] : memref<2x8xf32, #tpu.memory_space<vmem>>, vector<1x8xf32>
      %cst_18 = arith.constant 9.99999974E-6 : f32
      %27 = vector.broadcast %cst_18 : f32 to vector<1x8xf32>
      %28 = arith.addf %25, %27 : vector<1x8xf32>
      %29 = math.rsqrt %28 : vector<1x8xf32>
      %30 = arith.mulf %26, %29 : vector<1x8xf32>
      %c1_19 = arith.constant 1 : index
      %c0_20 = arith.constant 0 : index
      %31 = vector.load %arg5[%c1_19, %c0_20] : memref<2x8xf32, #tpu.memory_space<vmem>>, vector<1x8xf32>
      %32 = arith.mulf %19, %30 : vector<1x8xf32>
      %33 = arith.subf %31, %32 : vector<1x8xf32>
      %34 = vector.broadcast %30 : vector<1x8xf32> to vector<128x8xf32>
      %35 = arith.mulf %2, %34 : vector<128x8xf32>
      %36 = vector.broadcast %33 : vector<1x8xf32> to vector<128x8xf32>
      %37 = arith.addf %35, %36 : vector<128x8xf32>
      %cst_21 = arith.constant 0.000000e+00 : f32
      %38 = vector.broadcast %cst_21 : f32 to vector<128x8xf32>
      %39 = arith.maximumf %37, %38 : vector<128x8xf32>
      %40 = vector.broadcast %3 : vector<128x1xf32> to vector<128x8xf32>
      %41 = arith.mulf %39, %40 : vector<128x8xf32>
      %c0_22 = arith.constant 0 : index
      %c0_23 = arith.constant 0 : index
      %42 = vector.load %arg6[%c0_22, %c0_23] : memref<128x8xf32, #tpu.memory_space<vmem>>, vector<128x8xf32>
      tpu.vector_store %arg6[%c0_22, %c0_23], %41 {strides = array<i32>} : memref<128x8xf32, #tpu.memory_space<vmem>>, vector<128x8xf32>,
    } else {
    }
    return
  }
  func.func @transform_0(%arg0: i32, %arg1: i32) -> (i32, i32) {
    %c0_i32 = arith.constant 0 : i32
    %c0_i32_0 = arith.constant 0 : i32
    return %arg1, %c0_i32 : i32, i32
  }
  func.func @transform_1(%arg0: i32, %arg1: i32) -> (i32, i32) {
    %c0_i32 = arith.constant 0 : i32
    %c0_i32_0 = arith.constant 0 : i32
    %c0_i32_1 = arith.constant 0 : i32
    return %c0_i32, %c0_i32_0 : i32, i32
  }
  func.func @transform_2(%arg0: i32, %arg1: i32) -> (i32, i32) {
    %c0_i32 = arith.constant 0 : i32
    %c0_i32_0 = arith.constant 0 : i32
    return %arg1, %c0_i32 : i32, i32
  }
  func.func @transform_3(%arg0: i32, %arg1: i32) -> (i32, i32) {
    %c0_i32 = arith.constant 0 : i32
    %c0_i32_0 = arith.constant 0 : i32
    %c0_i32_1 = arith.constant 0 : i32
    return %c0_i32, %c0_i32_0 : i32, i32
  }
  func.func @transform_4(%arg0: i32, %arg1: i32) -> (i32, i32) {
    %0 = arith.muli %arg0, %arg1 : i32
    %c0_i32 = arith.constant 0 : i32
    %c0_i32_0 = arith.constant 0 : i32
    return %0, %c0_i32 : i32, i32
  }
}

module attributes {stable_mosaic.version = 11 : i64} {
  func.func @kernel(%arg0: i32, %arg1: i32, %arg2: memref<32x72xbf16, #tpu.memory_space<vmem>>, %arg3: memref<72x16xbf16, #tpu.memory_space<vmem>>, %arg4: memref<32x1xf32, #tpu.memory_space<vmem>>, %arg5: memref<2x16xf32, #tpu.memory_space<vmem>>, %arg6: memref<32x16xf32, #tpu.memory_space<vmem>>, %arg7: memref<8x16xf32, #tpu.memory_space<vmem>>) attributes {dimension_semantics = [#tpu.dimension_semantics<arbitrary>, #tpu.dimension_semantics<arbitrary>], iteration_bounds = array<i64: 2, 1>, scalar_prefetch = 0 : i64, scratch_operands = 1 : i64, tpu.core_type = #tpu.core_type<tc>, window_params = [{transform_indices = @transform_0, window_bounds = array<i64: 32, 72>}, {pipeline_mode = #tpu.pipeline_mode<synchronous>, transform_indices = @transform_1, window_bounds = array<i64: 72, 16>}, {transform_indices = @transform_2, window_bounds = array<i64: 32, 1>}, {pipeline_mode = #tpu.pipeline_mode<synchronous>, transform_indices = @transform_3, window_bounds = array<i64: 2, 16>}, {transform_indices = @transform_4, window_bounds = array<i64: 32, 16>}]} {
    %c0 = arith.constant 0 : index
    %c0_0 = arith.constant 0 : index
    %0 = vector.load %arg2[%c0, %c0_0] : memref<32x72xbf16, #tpu.memory_space<vmem>>, vector<32x72xbf16>
    %c0_1 = arith.constant 0 : index
    %c0_2 = arith.constant 0 : index
    %1 = vector.load %arg3[%c0_1, %c0_2] : memref<72x16xbf16, #tpu.memory_space<vmem>>, vector<72x16xbf16>
    %cst = arith.constant dense<0.000000e+00> : vector<32x16xf32>
    %2 = tpu.matmul %0, %1, %cst {dimension_numbers = #tpu.dot_dimension_numbers<[1], [0], [0], [1], [0, 0, 1, 1], [], []>} : vector<32x72xbf16>, vector<72x16xbf16>, vector<32x16xf32> -> vector<32x16xf32>
    %c0_3 = arith.constant 0 : index
    %c0_4 = arith.constant 0 : index
    %3 = vector.load %arg4[%c0_3, %c0_4] : memref<32x1xf32, #tpu.memory_space<vmem>>, vector<32x1xf32>
    %c0_i32 = arith.constant 0 : i32
    %4 = arith.cmpi eq, %arg0, %c0_i32 : i32
    %c0_i32_5 = arith.constant 0 : i32
    %5 = arith.cmpi eq, %arg1, %c0_i32_5 : i32
    %6 = arith.andi %4, %5 : i1
    %7 = arith.extui %6 : i1 to i32
    %c0_i32_6 = arith.constant 0 : i32
    %8 = arith.cmpi ne, %7, %c0_i32_6 : i32
    scf.if %8 {
      %cst_10 = arith.constant 0.000000e+00 : f32
      %15 = vector.broadcast %cst_10 : f32 to vector<8x16xf32>
      %c0_11 = arith.constant 0 : index
      %c0_12 = arith.constant 0 : index
      %16 = vector.load %arg7[%c0_11, %c0_12] : memref<8x16xf32, #tpu.memory_space<vmem>>, vector<8x16xf32>
      tpu.vector_store %arg7[%c0_11, %c0_12], %15 {strides = array<i32>} : memref<8x16xf32, #tpu.memory_space<vmem>>, vector<8x16xf32>,
    } else {
    }
    %c0_i32_7 = arith.constant 0 : i32
    %9 = arith.cmpi eq, %arg0, %c0_i32_7 : i32
    %10 = arith.extui %9 : i1 to i32
    %c0_i32_8 = arith.constant 0 : i32
    %11 = arith.cmpi ne, %10, %c0_i32_8 : i32
    scf.if %11 {
      %15 = vector.broadcast %3 : vector<32x1xf32> to vector<32x16xf32>
      %16 = arith.mulf %2, %15 : vector<32x16xf32>
      %c0_10 = arith.constant 0 : index
      %c0_11 = arith.constant 0 : index
      %17 = vector.load %arg7[%c0_10, %c0_11] : memref<8x16xf32, #tpu.memory_space<vmem>>, vector<1x16xf32>
      %cst_12 = arith.constant dense<0.000000e+00> : vector<16xf32>
      %18 = vector.multi_reduction <add>, %16, %cst_12 [0] : vector<32x16xf32> to vector<16xf32>
      %19 = vector.shape_cast %18 : vector<16xf32> to vector<1x16xf32>
      %20 = arith.addf %17, %19 : vector<1x16xf32>
      %c0_13 = arith.constant 0 : index
      %c0_14 = arith.constant 0 : index
      %21 = vector.load %arg7[%c0_13, %c0_14] : memref<8x16xf32, #tpu.memory_space<vmem>>, vector<1x16xf32>
      tpu.vector_store %arg7[%c0_13, %c0_14], %20 {strides = array<i32>} : memref<8x16xf32, #tpu.memory_space<vmem>>, vector<1x16xf32>,
      %c1 = arith.constant 1 : index
      %c0_15 = arith.constant 0 : index
      %22 = vector.load %arg7[%c1, %c0_15] : memref<8x16xf32, #tpu.memory_space<vmem>>, vector<1x16xf32>
      %23 = arith.mulf %16, %16 : vector<32x16xf32>
      %cst_16 = arith.constant dense<0.000000e+00> : vector<16xf32>
      %24 = vector.multi_reduction <add>, %23, %cst_16 [0] : vector<32x16xf32> to vector<16xf32>
      %25 = vector.shape_cast %24 : vector<16xf32> to vector<1x16xf32>
      %26 = arith.addf %22, %25 : vector<1x16xf32>
      %c1_17 = arith.constant 1 : index
      %c0_18 = arith.constant 0 : index
      %27 = vector.load %arg7[%c1_17, %c0_18] : memref<8x16xf32, #tpu.memory_space<vmem>>, vector<1x16xf32>
      tpu.vector_store %arg7[%c1_17, %c0_18], %26 {strides = array<i32>} : memref<8x16xf32, #tpu.memory_space<vmem>>, vector<1x16xf32>,
      %c2 = arith.constant 2 : index
      %c0_19 = arith.constant 0 : index
      %28 = vector.load %arg7[%c2, %c0_19] : memref<8x16xf32, #tpu.memory_space<vmem>>, vector<1x16xf32>
      %29 = vector.shape_cast %3 : vector<32x1xf32> to vector<1x32x1xf32>
      %cst_20 = arith.constant dense<0.000000e+00> : vector<1xf32>
      %30 = vector.multi_reduction <add>, %29, %cst_20 [1, 2] : vector<1x32x1xf32> to vector<1xf32>
      %31 = vector.shape_cast %30 : vector<1xf32> to vector<1x1x1xf32>
      %32 = vector.extract %31[0, 0, 0] : f32 from vector<1x1x1xf32>
      %33 = vector.broadcast %32 : f32 to vector<1x16xf32>
      %34 = arith.addf %28, %33 : vector<1x16xf32>
      %c2_21 = arith.constant 2 : index
      %c0_22 = arith.constant 0 : index
      %35 = vector.load %arg7[%c2_21, %c0_22] : memref<8x16xf32, #tpu.memory_space<vmem>>, vector<1x16xf32>
      tpu.vector_store %arg7[%c2_21, %c0_22], %34 {strides = array<i32>} : memref<8x16xf32, #tpu.memory_space<vmem>>, vector<1x16xf32>,
    } else {
    }
    %c1_i32 = arith.constant 1 : i32
    %12 = arith.cmpi eq, %arg0, %c1_i32 : i32
    %13 = arith.extui %12 : i1 to i32
    %c0_i32_9 = arith.constant 0 : i32
    %14 = arith.cmpi ne, %13, %c0_i32_9 : i32
    scf.if %14 {
      %c2 = arith.constant 2 : index
      %c0_10 = arith.constant 0 : index
      %15 = vector.load %arg7[%c2, %c0_10] : memref<8x16xf32, #tpu.memory_space<vmem>>, vector<1x16xf32>
      %cst_11 = arith.constant 1.000000e+00 : f32
      %16 = vector.broadcast %cst_11 : f32 to vector<1x16xf32>
      %17 = arith.maximumf %15, %16 : vector<1x16xf32>
      %c0_12 = arith.constant 0 : index
      %c0_13 = arith.constant 0 : index
      %18 = vector.load %arg7[%c0_12, %c0_13] : memref<8x16xf32, #tpu.memory_space<vmem>>, vector<1x16xf32>
      %19 = arith.divf %18, %17 : vector<1x16xf32>
      %c1 = arith.constant 1 : index
      %c0_14 = arith.constant 0 : index
      %20 = vector.load %arg7[%c1, %c0_14] : memref<8x16xf32, #tpu.memory_space<vmem>>, vector<1x16xf32>
      %21 = arith.divf %20, %17 : vector<1x16xf32>
      %22 = arith.mulf %19, %19 : vector<1x16xf32>
      %23 = arith.subf %21, %22 : vector<1x16xf32>
      %cst_15 = arith.constant 0.000000e+00 : f32
      %24 = vector.broadcast %cst_15 : f32 to vector<1x16xf32>
      %25 = arith.maximumf %23, %24 : vector<1x16xf32>
      %c0_16 = arith.constant 0 : index
      %c0_17 = arith.constant 0 : index
      %26 = vector.load %arg5[%c0_16, %c0_17] : memref<2x16xf32, #tpu.memory_space<vmem>>, vector<1x16xf32>
      %cst_18 = arith.constant 9.99999974E-6 : f32
      %27 = vector.broadcast %cst_18 : f32 to vector<1x16xf32>
      %28 = arith.addf %25, %27 : vector<1x16xf32>
      %29 = math.rsqrt %28 : vector<1x16xf32>
      %30 = arith.mulf %26, %29 : vector<1x16xf32>
      %c1_19 = arith.constant 1 : index
      %c0_20 = arith.constant 0 : index
      %31 = vector.load %arg5[%c1_19, %c0_20] : memref<2x16xf32, #tpu.memory_space<vmem>>, vector<1x16xf32>
      %32 = arith.mulf %19, %30 : vector<1x16xf32>
      %33 = arith.subf %31, %32 : vector<1x16xf32>
      %34 = vector.broadcast %30 : vector<1x16xf32> to vector<32x16xf32>
      %35 = arith.mulf %2, %34 : vector<32x16xf32>
      %36 = vector.broadcast %33 : vector<1x16xf32> to vector<32x16xf32>
      %37 = arith.addf %35, %36 : vector<32x16xf32>
      %cst_21 = arith.constant 0.000000e+00 : f32
      %38 = vector.broadcast %cst_21 : f32 to vector<32x16xf32>
      %39 = arith.maximumf %37, %38 : vector<32x16xf32>
      %40 = vector.broadcast %3 : vector<32x1xf32> to vector<32x16xf32>
      %41 = arith.mulf %39, %40 : vector<32x16xf32>
      %c0_22 = arith.constant 0 : index
      %c0_23 = arith.constant 0 : index
      %42 = vector.load %arg6[%c0_22, %c0_23] : memref<32x16xf32, #tpu.memory_space<vmem>>, vector<32x16xf32>
      tpu.vector_store %arg6[%c0_22, %c0_23], %41 {strides = array<i32>} : memref<32x16xf32, #tpu.memory_space<vmem>>, vector<32x16xf32>,
    } else {
    }
    return
  }
  func.func @transform_0(%arg0: i32, %arg1: i32) -> (i32, i32) {
    %c0_i32 = arith.constant 0 : i32
    %c0_i32_0 = arith.constant 0 : i32
    return %arg1, %c0_i32 : i32, i32
  }
  func.func @transform_1(%arg0: i32, %arg1: i32) -> (i32, i32) {
    %c0_i32 = arith.constant 0 : i32
    %c0_i32_0 = arith.constant 0 : i32
    %c0_i32_1 = arith.constant 0 : i32
    return %c0_i32, %c0_i32_0 : i32, i32
  }
  func.func @transform_2(%arg0: i32, %arg1: i32) -> (i32, i32) {
    %c0_i32 = arith.constant 0 : i32
    %c0_i32_0 = arith.constant 0 : i32
    return %arg1, %c0_i32 : i32, i32
  }
  func.func @transform_3(%arg0: i32, %arg1: i32) -> (i32, i32) {
    %c0_i32 = arith.constant 0 : i32
    %c0_i32_0 = arith.constant 0 : i32
    %c0_i32_1 = arith.constant 0 : i32
    return %c0_i32, %c0_i32_0 : i32, i32
  }
  func.func @transform_4(%arg0: i32, %arg1: i32) -> (i32, i32) {
    %0 = arith.muli %arg0, %arg1 : i32
    %c0_i32 = arith.constant 0 : i32
    %c0_i32_0 = arith.constant 0 : i32
    return %0, %c0_i32 : i32, i32
  }
}

</mosaic_0001>

<bundles_post_ra>
// kernel: sparse_encoder_forward.2
= control target key start
LH: loop header
LB: loop body
LE: loop exit
PB: predicated region body
PF: predicated region fallthrough
CT: control target
= control target key end

     0   :  { %s1159_s15 = smov 0   ;;  %s1161_s16 = smov 0   ;;  %s1580_s0 = inlined_call_operand.vmem [shape: bf16[128,36], index: 0, kind: input, shape index: {}]   ;;  %s1581_s1 = inlined_call_operand.vmem [shape: bf16[36,8], index: 1, kind: input, shape index: {}]   ;;  %s1582_s2 = inlined_call_operand.vmem [shape: f32[128,1], index: 2, kind: input, shape index: {}]   ;;  %s1583_s3 = inlined_call_operand.vmem [shape: f32[2,8], index: 3, kind: input, shape index: {}]   ;;  %s1584_s4 = inlined_call_operand.vmem [shape: f32[128,8], index: 4, kind: output, shape index: {}]  }
   0x1   :  { %s1163_s17 = smov 0  }
   0x2 LB: > { %s26_s18 = sadd.s32 1, %s1125_s16  ;;  %p990_p0 = scmp.ge.s32.totalorder %s1129_s17, 1  ;;  %s1129_s17 = sphi %s1163_s17, %s14_s17   ;;  %s1125_s16 = sphi %s1161_s16, %s1586_s16   ;;  %s1121_s15 = sphi %s1159_s15, %s1585_s15  }
   0x3   : > { %p28_p1 = scmp.ge.s32.totalorder %s26_s18, 2  ;;  %p188_p2 = scmp.lt.s32.totalorder %s1129_s17, 3 }
   0x5   : > { %s1588_s18 = smov (%p28_p1, %s26_s18), 0  ;;  %p189_p3 = pnand %p990_p0, %p188_p2 }
   0x6   : > { %v1088_v0 = vld [vmem:[%s1581_s1] sm:$0xff] (!%p189_p3)   ;;  %v1089_v1 = vld [vmem:[%s1581_s1 + $0x8] sm:$0xff] (!%p189_p3)   ;;  %vm317_vm0 = vcmask (!%p189_p3), 293888   ;;  %v1090_v2 = vld [vmem:[%s1581_s1 + $0x10] ss:$0 sps:$4 sm:$0x33] (!%p189_p3)  }
   0x7   : > { %192 = sbr.rel (%p189_p3) target bundleno = 645 (0x285), region = 36  ;;  %1029 = vmatprep.subr.bf16.mxu0 (!%p189_p3), %v1088_v0  ;;  %1051 = vmatprep.subr.bf16.mxu1 (!%p189_p3), %v1088_v0  ;;  %v1091_v3 = vld [vmem:[%s1580_s0] sm:$0xff] (!%p189_p3)   ;;  %vm342_vm1 = vcmask (!%p189_p3), 1041408   ;;  %v1093_v6 = vld [vmem:[%s1580_s0 + $0x8] sm:$0xff] (!%p189_p3)   ;;  %v1095_v8 = vld [vmem:[%s1580_s0 + $0x10] sm:$0xff] (!%p189_p3)   ;;  %p459_p4 = scmp.eq.s32.totalorder (!%p189_p3), %s1121_s15, 0 }
   0x8   : > { %1030 = vmatpush3.bf16.msra.mxu0 (!%p189_p3), %v1088_v0  ;;  %1054 = vmatpush3.bf16.msra.mxu1 (!%p189_p3), %v1088_v0  ;;  %v1092_v4 = vld [vmem:[%s1580_s0 + $0x20] sm:$0xff] (!%p189_p3)   ;;  %v344_v5 = vsel (!%p189_p3), %vm342_vm1, %v1090_v2, 0  ;;  %v1094_v7 = vld [vmem:[%s1580_s0 + $0x28] sm:$0xff] (!%p189_p3)   ;;  %v1096_v9 = vld [vmem:[%s1580_s0 + $0x30] sm:$0xff] (!%p189_p3)  }
   0x9   : > { %1031 = vmatprep.subr.bf16.mxu0 (!%p189_p3), %v1089_v1  ;;  %1052 = vmatprep.subr.bf16.mxu1 (!%p189_p3), %v1089_v1  ;;  %v1097_v10 = vld [vmem:[%s1580_s0 + $0x18] sm:$0xff] (!%p189_p3)   ;;  %v1223_v12 = vld [vmem:[%s1582_s2] sm:$0xff] (!%p189_p3)  ;;  %v1228_v13 = vld [vmem:[%s1582_s2 + $0x8] sm:$0xff] (!%p189_p3) }
   0xa   : > { %1035 = vmatprep.mubr.msk.bf16.mxu0 (!%p189_p3), %vm317_vm0, %v1091_v3  ;;  %1043 = vmatprep.mubr.msk.bf16.mxu1 (!%p189_p3), %vm317_vm0, %v1092_v4  ;;  %v1098_v11 = vld [vmem:[%s1580_s0 + $0x38] sm:$0xff] (!%p189_p3)   ;;  %v1233_v14 = vld [vmem:[%s1582_s2 + $0x10] sm:$0xff] (!%p189_p3)  ;;  %v1244_v16 = vld [vmem:[%s1582_s2 + $0x20] sm:$0xff] (!%p189_p3) }
   0xb   : > { %v1239_v15 = vld [vmem:[%s1582_s2 + $0x18] sm:$0xff] (!%p189_p3)  ;;  %v1249_v17 = vld [vmem:[%s1582_s2 + $0x28] sm:$0xff] (!%p189_p3)  ;;  %v1254_v18 = vld [vmem:[%s1582_s2 + $0x30] sm:$0xff] (!%p189_p3) }
   0xc   : > { %1032 = vmatpush3.bf16.msra.mxu0 (!%p189_p3), %v1089_v1  ;;  %1055 = vmatpush3.bf16.msra.mxu1 (!%p189_p3), %v1089_v1  ;;  %v1259_v19 = vld [vmem:[%s1582_s2 + $0x38] sm:$0xff] (!%p189_p3)  ;;  %v1264_v20 = vld [vmem:[%s1582_s2 + $0x40] sm:$0xff] (!%p189_p3)  ;;  %v1269_v21 = vld [vmem:[%s1582_s2 + $0x48] sm:$0xff] (!%p189_p3) }
   0xd   : > { %1057 = vmatprep.subr.msk.bf16.mxu0 (!%p189_p3), %vm342_vm1, %v1090_v2  ;;  %1058 = vmatprep.subr.msk.bf16.mxu1 (!%p189_p3), %vm342_vm1, %v1090_v2  ;;  %v1274_v22 = vld [vmem:[%s1582_s2 + $0x50] sm:$0xff] (!%p189_p3)  ;;  %v1279_v23 = vld [vmem:[%s1582_s2 + $0x58] sm:$0xff] (!%p189_p3)  ;;  %v1284_v24 = vld [vmem:[%s1582_s2 + $0x60] sm:$0xff] (!%p189_p3) }
   0xe   : > { %v1289_v25 = vld [vmem:[%s1582_s2 + $0x68] sm:$0xff]  ;;  %v1294_v26 = vld [vmem:[%s1582_s2 + $0x70] sm:$0xff]  ;;  %v1299_v27 = vld [vmem:[%s1582_s2 + $0x78] sm:$0xff]  ;;  %vm465_vm2 = vcmask (%p459_p4), 64512   ;;  %v1131_v44 = vmov (%p459_p4), 0.0  }
   0xf   : > { %466 = vst.msk [vmem:[#allocation2] sm:$0xff] (%p459_p4), %vm465_vm2, %v1131_v44 }
  0x10   : > { %1034 = vmatpush3.bf16.msra.mxu0 %v344_v5  ;;  %1056 = vmatpush3.bf16.msra.mxu1 %v344_v5 }
  0x13   : > { %1036 = vmatmul.mubr.msk.bf16.vlgmr.msra.gmra.mrb[0].mxu0 %vm317_vm0, %v1093_v6  ;;  %1044 = vmatmul.mubr.msk.bf16.vlgmr.msra.gmra.mrb[0].mxu1 %vm317_vm0, %v1094_v7 }
  0x14   : > { %1039 = vmatprep.mubr.msk.bf16.mxu0 %vm317_vm0, %v1095_v8  ;;  %1047 = vmatprep.mubr.msk.bf16.mxu1 %vm317_vm0, %v1096_v9 }
  0x1b   : > { %1040 = vmatmul.mubr.msk.bf16.gmra.mrb[4].mxu0 %vm317_vm0, %v1097_v10  ;;  %1048 = vmatmul.mubr.msk.bf16.gmra.mrb[4].mxu1 %vm317_vm0, %v1098_v11 }
  0xe6   : > { %v1301_v28 = vpop.f32.mrb[0].mxu0  ;;  %v1303_v29 = vpop.f32.mrb[0].mxu1 }
  0xe7   : > { %v1305_v30 = vpop.f32.mrb[1].mxu0  ;;  %v1307_v31 = vpop.f32.mrb[1].mxu1 }
  0xe8   : > { %v1309_v32 = vpop.f32.mrb[2].mxu0  ;;  %v1311_v33 = vpop.f32.mrb[2].mxu1 }
  0xe9   : > { %v1313_v34 = vpop.f32.mrb[3].mxu0  ;;  %v1315_v35 = vpop.f32.mrb[3].mxu1 }
  0xeb   : > { %464 = sbr.rel (!%p459_p4) target bundleno = 242 (0xf2), region = 40 }
  0xee   : > { %v1317_v36 = vpop.f32.mrb[4].mxu0  ;;  %v1319_v37 = vpop.f32.mrb[4].mxu1 }
  0xef   : > { %v1321_v38 = vpop.f32.mrb[5].mxu0  ;;  %v1323_v39 = vpop.f32.mrb[5].mxu1 }
  0xf0   : > { %v1325_v40 = vpop.f32.mrb[6].mxu0  ;;  %v1327_v41 = vpop.f32.mrb[6].mxu1 }
  0xf1   : > { %v1329_v42 = vpop.f32.mrb[7].mxu0  ;;  %v1331_v43 = vpop.f32.mrb[7].mxu1 }
  0xf2 PF: > { %p1011_p5 = scmp.ne.s32.totalorder %s1121_s15, 0 }
  0xf3   : > { %vm665_vm3 = vcmask (!%p1011_p5), 7168   ;;  %v1132_v45 = vmov (!%p1011_p5), 0   ;;  %vm567_vm4 = vcmask (!%p1011_p5), 64512   ;;  %vm606_vm5 = vcmask (!%p1011_p5), 57344  }
  0xf4   : > { %469 = sbr.rel (%p1011_p5) target bundleno = 483 (0x1e3), region = 44  ;;  %1100 = vset.pattern.permute.xlu1 (!%p1011_p5), %v1132_v45  ;;  %v666_v46 = vsel (!%p1011_p5), %vm665_vm3, %v1223_v12, 0.0  ;;  %v667_v47 = vsel (!%p1011_p5), %vm665_vm3, %v1228_v13, 0.0  ;;  %v669_v48 = vsel (!%p1011_p5), %vm665_vm3, %v1233_v14, 0.0  ;;  %1099 = vset.pattern.permute.xlu0 (!%p1011_p5), %v1132_v45  ;;  %v671_v50 = vsel (!%p1011_p5), %vm665_vm3, %v1239_v15, 0.0 }
  0xf5   : > { %477 = vperm.xlu1 (!%p1011_p5), %1100, %v1228_v13   ;;  %v668_v49 = vadd.f32 (!%p1011_p5), %v667_v47, %v666_v46  ;;  %v673_v52 = vsel (!%p1011_p5), %vm665_vm3, %v1244_v16, 0.0  ;;  %v675_v54 = vsel (!%p1011_p5), %vm665_vm3, %v1249_v17, 0.0  ;;  %v677_v56 = vsel (!%p1011_p5), %vm665_vm3, %v1254_v18, 0.0 }
  0xf6   : > { %v679_v58 = vsel (!%p1011_p5), %vm665_vm3, %v1259_v19, 0.0  ;;  %v681_v60 = vsel (!%p1011_p5), %vm665_vm3, %v1264_v20, 0.0  ;;  %v683_v62 = vsel (!%p1011_p5), %vm665_vm3, %v1269_v21, 0.0  ;;  %v685_v0 = vsel (!%p1011_p5), %vm665_vm3, %v1274_v22, 0.0 }
  0xf7   : > { %v670_v51 = vadd.f32 (!%p1011_p5), %v669_v48, %v668_v49  ;;  %v687_v2 = vsel (!%p1011_p5), %vm665_vm3, %v1279_v23, 0.0  ;;  %v689_v4 = vsel (!%p1011_p5), %vm665_vm3, %v1284_v24, 0.0  ;;  %v691_v6 = vsel (!%p1011_p5), %vm665_vm3, %v1289_v25, 0.0 }
  0xf8   : > { %v693_v8 = vsel (!%p1011_p5), %vm665_vm3, %v1294_v26, 0.0  ;;  %v695_v10 = vsel (!%p1011_p5), %vm665_vm3, %v1299_v27, 0.0 }
  0xf9   : > { %482 = vperm.xlu1 (!%p1011_p5), %1100, %v1233_v14   ;;  %v672_v53 = vadd.f32 (!%p1011_p5), %v671_v50, %v670_v51 }
  0xfb   : > { %v674_v55 = vadd.f32 %v673_v52, %v672_v53 }
  0xfd   : > { %487 = vperm.xlu1 %1100, %v1239_v15   ;;  %v676_v57 = vadd.f32 %v675_v54, %v674_v55 }
  0xff   : > { %v678_v59 = vadd.f32 %v677_v56, %v676_v57 }
 0x101   : > { %492 = vperm.xlu1 %1100, %v1244_v16   ;;  %v680_v61 = vadd.f32 %v679_v58, %v678_v59 }
 0x103   : > { %v682_v63 = vadd.f32 %v681_v60, %v680_v61 }
 0x105   : > { %497 = vperm.xlu1 %1100, %v1249_v17   ;;  %v684_v1 = vadd.f32 %v683_v62, %v682_v63 }
 0x107   : > { %v686_v3 = vadd.f32 %v685_v0, %v684_v1 }
 0x109   : > { %502 = vperm.xlu1 %1100, %v1254_v18   ;;  %v688_v5 = vadd.f32 %v687_v2, %v686_v3 }
 0x10b   : > { %v690_v7 = vadd.f32 %v689_v4, %v688_v5 }
 0x10d   : > { %507 = vperm.xlu1 %1100, %v1259_v19   ;;  %v692_v9 = vadd.f32 %v691_v6, %v690_v7 }
 0x10f   : > { %v694_v11 = vadd.f32 %v693_v8, %v692_v9 }
 0x111   : > { %512 = vperm.xlu1 %1100, %v1264_v20   ;;  %v696_v44 = vadd.f32 %v695_v10, %v694_v11 }
 0x113   : > { %697 = vadd.xlane.f32.xlu0 %v696_v44 }
 0x115   : > { %517 = vperm.xlu1 %1100, %v1269_v21  }
 0x119   : > { %522 = vperm.xlu1 %1100, %v1274_v22  }
 0x11d   : > { %527 = vperm.xlu1 %1100, %v1279_v23  }
 0x121   : > { %532 = vperm.xlu1 %1100, %v1284_v24  }
 0x125   : > { %542 = vperm.xlu1 %1100, %v1294_v26  }
 0x129   : > { %472 = vperm.xlu0 %1099, %v1223_v12  }
 0x12d   : > { %537 = vperm.xlu0 %1099, %v1289_v25  }
 0x131   : > { %547 = vperm.xlu0 %1099, %v1299_v27  }
 0x174   : > { %v478_v45 = vpop.permute.xlu1 %477 }
 0x175   : > { %v551_v56 = vmul.f32 %v478_v45, %v1313_v34 }
 0x177   : > { %v610_v61 = vmul.f32 %v551_v56, %v551_v56  ;;  %v569_v2 = vsel %vm567_vm4, %v551_v56, 0.0 }
 0x178   : > { %v483_v46 = vpop.permute.xlu1 %482 }
 0x179   : > { %v552_v59 = vmul.f32 %v1301_v28, %v483_v46  ;;  %v626_v9 = vsel %vm567_vm4, %v610_v61, 0.0 }
 0x17b   : > { %v611_v3 = vmul.f32 %v552_v59, %v552_v59  ;;  %v571_v11 = vsel %vm567_vm4, %v552_v59, 0.0 }
 0x17c   : > { %v488_v47 = vpop.permute.xlu1 %487 }
 0x17d   : > { %v553_v63 = vmul.f32 %v1309_v32, %v488_v47 }
 0x17f   : > { %v612_v44 = vmul.f32 %v553_v63, %v553_v63 }
 0x180   : > { %v493_v48 = vpop.permute.xlu1 %492 }
 0x181   : > { %v554_v5 = vmul.f32 %v493_v48, %v1321_v38  ;;  %v573_v48 = vsel %vm567_vm4, %v553_v63, 0.0  ;;  %v630_v59 = vsel %vm567_vm4, %v612_v44, 0.0 }
 0x184   : > { %v498_v49 = vpop.permute.xlu1 %497 }
 0x185   : > { %v555_v45 = vmul.f32 %v498_v49, %v1329_v42 }
 0x187   : > { %v614_v49 = vmul.f32 %v555_v45, %v555_v45 }
 0x188   : > { %v503_v50 = vpop.permute.xlu1 %502 }
 0x189   : > { %v556_v56 = vmul.f32 %v1317_v36, %v503_v50 }
 0x18b   : > { %v615_v63 = vmul.f32 %v556_v56, %v556_v56 }
 0x18c   : > { %v508_v51 = vpop.permute.xlu1 %507 }
 0x190   : > { %v513_v52 = vpop.permute.xlu1 %512 }
 0x194   : > { %v518_v57 = vpop.permute.xlu1 %517 }
 0x198   : > { %v523_v4 = vpop.permute.xlu1 %522 }
 0x1a0   : > { %v698_v53 = vpop.xlane.xlu0 %697 }
 0x1a1   : > { %v699_v54 = vrot.slane %v698_v53, 4 }
 0x1a3   : > { %v700_v55 = vadd.f32 %v699_v54, %v698_v53  ;;  %v628_v54 = vsel %vm567_vm4, %v611_v3, 0.0  ;;  %v577_v3 = vsel %vm567_vm4, %v555_v45, 0.0 }
 0x1a5   : > { %v701_v58 = vrot.slane %v700_v55, 2 }
 0x1a7   : > { %v702_v60 = vadd.f32 %v701_v58, %v700_v55  ;;  %v613_v55 = vmul.f32 %v554_v5, %v554_v5  ;;  %v528_v58 = vpop.permute.xlu1 %527 }
 0x1a8   : > { %v473_v62 = vpop.permute.xlu0 %472 }
 0x1a9   : > { %v550_v0 = vmul.f32 %v473_v62, %v1305_v30  ;;  %v703_v1 = vrot.slane %v702_v60, 1  ;;  %v575_v62 = vsel %vm567_vm4, %v554_v5, 0.0  ;;  %v559_v5 = vmul.f32 %v518_v57, %v1315_v35 }
 0x1aa   : > { %v561_v57 = vmul.f32 %v1311_v33, %v528_v58 }
 0x1ab   : > { %v568_v6 = vsel %vm567_vm4, %v550_v0, 0.0  ;;  %v609_v7 = vmul.f32 %v550_v0, %v550_v0  ;;  %v704_v8 = vadd.f32 %v703_v1, %v702_v60  ;;  %v557_v0 = vmul.f32 %v1325_v40, %v508_v51  ;;  %v533_v44 = vpop.permute.xlu1 %532 }
 0x1ac   : > { %v570_v10 = vadd.f32 %v569_v2, %v568_v6  ;;  %v632_v6 = vsel %vm567_vm4, %v613_v55, 0.0  ;;  %v538_v55 = vpop.permute.xlu0 %537 }
 0x1ad   : > { %v625_v46 = vsel %vm567_vm4, %v609_v7, 0.0  ;;  %1059 = vpush %v704_v8  ;;  %v558_v7 = vmul.f32 %v513_v52, %v1307_v31 }
 0x1ae   : > { %v572_v47 = vadd.f32 %v571_v11, %v570_v10  ;;  %v627_v53 = vadd.f32 %v626_v9, %v625_v46  ;;  %v634_v9 = vsel %vm567_vm4, %v614_v49, 0.0  ;;  %v579_v10 = vsel %vm567_vm4, %v556_v56, 0.0 }
 0x1af   : > { %v616_v11 = vmul.f32 %v557_v0, %v557_v0  ;;  %v617_v45 = vmul.f32 %v558_v7, %v558_v7  ;;  %v583_v56 = vsel %vm567_vm4, %v558_v7, 0.0  ;;  %v620_v7 = vmul.f32 %v561_v57, %v561_v57 }
 0x1b0   : > { %v574_v60 = vadd.f32 %v573_v48, %v572_v47  ;;  %v629_v61 = vadd.f32 %v628_v54, %v627_v53  ;;  %v636_v47 = vsel %vm567_vm4, %v615_v63, 0.0  ;;  %v581_v53 = vsel %vm567_vm4, %v557_v0, 0.0 }
 0x1b1   : > { %v560_v54 = vmul.f32 %v1303_v29, %v523_v4  ;;  %v640_v49 = vsel %vm567_vm4, %v617_v45, 0.0  ;;  %v543_v4 = vpop.permute.xlu1 %542 }
 0x1b2   : > { %v576_v1 = vadd.f32 %v575_v62, %v574_v60  ;;  %v631_v2 = vadd.f32 %v630_v59, %v629_v61  ;;  %v638_v60 = vsel %vm567_vm4, %v616_v11, 0.0  ;;  %v618_v61 = vmul.f32 %v559_v5, %v559_v5 }
 0x1b3   : > { %v619_v0 = vmul.f32 %v560_v54, %v560_v54 }
 0x1b4   : > { %v578_v50 = vadd.f32 %v577_v3, %v576_v1  ;;  %v633_v8 = vadd.f32 %v632_v6, %v631_v2  ;;  %v585_v1 = vsel %vm567_vm4, %v559_v5, 0.0  ;;  %v562_v2 = vmul.f32 %v533_v44, %v1323_v39 }
 0x1b5   : > { %v642_v63 = vsel %vm567_vm4, %v618_v61, 0.0  ;;  %v644_v11 = vsel %vm567_vm4, %v619_v0, 0.0  ;;  %v589_v5 = vsel %vm567_vm4, %v561_v57, 0.0  ;;  %v564_v44 = vmul.f32 %v1319_v37, %v543_v4 }
 0x1b6   : > { %v580_v51 = vadd.f32 %v579_v10, %v578_v50  ;;  %v635_v46 = vadd.f32 %v634_v9, %v633_v8  ;;  %v587_v50 = vsel %vm567_vm4, %v560_v54, 0.0  ;;  %v563_v8 = vmul.f32 %v538_v55, %v1331_v43  ;;  %v548_v10 = vpop.permute.xlu0 %547 }
 0x1b7   : > { %v591_v45 = vsel %vm567_vm4, %v562_v2, 0.0 }
 0x1b8   : > { %v637_v52 = vadd.f32 %v636_v47, %v635_v46  ;;  %v582_v48 = vadd.f32 %v581_v53, %v580_v51  ;;  %v621_v51 = vmul.f32 %v562_v2, %v562_v2  ;;  %v646_v53 = vsel %vm567_vm4, %v620_v7, 0.0 }
 0x1b9   : > { %v622_v54 = vmul.f32 %v563_v8, %v563_v8  ;;  %v593_v61 = vsel %vm567_vm4, %v563_v8, 0.0 }
 0x1ba   : > { %v584_v59 = vadd.f32 %v583_v56, %v582_v48  ;;  %v639_v62 = vadd.f32 %v638_v60, %v637_v52  ;;  %v565_v52 = vmul.f32 %v1327_v41, %v548_v10  ;;  %v648_v60 = vsel %vm567_vm4, %v621_v51, 0.0 }
 0x1bb   : > { %v623_v56 = vmul.f32 %v564_v44, %v564_v44 }
 0x1bc   : > { %v586_v6 = vadd.f32 %v585_v1, %v584_v59  ;;  %v641_v3 = vadd.f32 %v640_v49, %v639_v62  ;;  %v595_v62 = vsel %vm567_vm4, %v564_v44, 0.0  ;;  %v650_v49 = vsel %vm567_vm4, %v622_v54, 0.0  ;;  %v608_v54 = vld [vmem:[#allocation2 + $0x1] sm:$0x1] }
 0x1bd   : > { %v624_v1 = vmul.f32 %v565_v52, %v565_v52  ;;  %v652_v2 = vsel %vm567_vm4, %v623_v56, 0.0 }
 0x1be   : > { %v588_v58 = vadd.f32 %v587_v50, %v586_v6  ;;  %v643_v9 = vadd.f32 %v642_v63, %v641_v3  ;;  %v597_v6 = vsel %vm567_vm4, %v565_v52, 0.0 }
 0x1bf   : > { %v654_v50 = vsel %vm567_vm4, %v624_v1, 0.0 }
 0x1c0   : > { %v590_v46 = vadd.f32 %v589_v5, %v588_v58  ;;  %v645_v47 = vadd.f32 %v644_v11, %v643_v9 }
 0x1c2   : > { %v592_v48 = vadd.f32 %v591_v45, %v590_v46  ;;  %v647_v55 = vadd.f32 %v646_v53, %v645_v47  ;;  %v566_v47 = vld [vmem:[#allocation2] sm:$0x1] }
 0x1c4   : > { %v649_v57 = vadd.f32 %v648_v60, %v647_v55  ;;  %v594_v59 = vadd.f32 %v593_v61, %v592_v48  ;;  %v664_v60 = vld [vmem:[#allocation2 + $0x2] sm:$0x1] }
 0x1c6   : > { %v651_v0 = vadd.f32 %v650_v49, %v649_v57  ;;  %v596_v4 = vadd.f32 %v595_v62, %v594_v59 }
 0x1c8   : > { %v653_v3 = vadd.f32 %v652_v2, %v651_v0  ;;  %v598_v63 = vadd.f32 %v597_v6, %v596_v4 }
 0x1ca   : > { %v599_v7 = vrot.slane %v598_v63, 4  ;;  %v655_v58 = vadd.f32 %v654_v50, %v653_v3 }
 0x1cc   : > { %v600_v8 = vadd.f32 %v599_v7, %v598_v63  ;;  %v656_v9 = vrot.slane %v655_v58, 4 }
 0x1ce   : > { %v601_v10 = vrot.slane %v600_v8, 2  ;;  %v657_v11 = vadd.f32 %v656_v9, %v655_v58 }
 0x1d0   : > { %v602_v5 = vadd.f32 %v601_v10, %v600_v8  ;;  %v658_v51 = vrot.slane %v657_v11, 2 }
 0x1d2   : > { %v603_v44 = vrot.slane %v602_v5, 1  ;;  %v659_v46 = vadd.f32 %v658_v51, %v657_v11 }
 0x1d4   : > { %v604_v53 = vadd.f32 %v603_v44, %v602_v5  ;;  %v660_v45 = vrot.slane %v659_v46, 1 }
 0x1d6   : > { %v605_v52 = vadd.f32 %v604_v53, %v566_v47  ;;  %v661_v48 = vadd.f32 %v660_v45, %v659_v46 }
 0x1d8   : > { %607 = vst.msk [vmem:[#allocation2] sm:$0x1] %vm606_vm5, %v605_v52  ;;  %v662_v55 = vadd.f32 %v661_v48, %v608_v54 }
 0x1da   : > { %663 = vst.msk [vmem:[#allocation2 + $0x1] sm:$0x1] %vm606_vm5, %v662_v55 }
 0x1de   : > { %s1060_s29 = spop %1059 }
 0x1df   : > { %v706_v56 = vstv %s1060_s29 }
 0x1e0   : > { %v707_v61 = vadd.f32 %v706_v56, %v664_v60 }
 0x1e2   : > { %708 = vst.msk [vmem:[#allocation2 + $0x2] sm:$0x1] %vm606_vm5, %v707_v61 }
 0x1e3 PF: > { %p1012_p6 = scmp.ne.s32.totalorder %s1121_s15, 1 }
 0x1e4   : > { %v1133_v57 = vmov (!%p1012_p6), 0   ;;  %v727_v49 = vld [vmem:[%s1583_s3 + $0x1] sm:$0x1] (!%p1012_p6)  ;;  %vm882_vm6 = vcmask (!%p1012_p6), 64512  }
 0x1e5   : > { %712 = sbr.rel (%p1012_p6) target bundleno = 645 (0x285), region = 48  ;;  %1102 = vset.pattern.permute.xlu1 (!%p1012_p6), %v1133_v57  ;;  %1101 = vset.pattern.permute.xlu0 (!%p1012_p6), %v1133_v57 }
 0x1e6   : > { %798 = vperm.xlu1 (!%p1012_p6), %1102, %v1233_v14   ;;  %788 = vperm.xlu0 (!%p1012_p6), %1101, %v1223_v12  }
 0x1e9   : > { %v713_v12 = vld [vmem:[#allocation2 + $0x2] sm:$0x1] (!%p1012_p6) }
 0x1ea   : > { %803 = vperm.xlu1 (!%p1012_p6), %1102, %v1239_v15   ;;  %793 = vperm.xlu0 (!%p1012_p6), %1101, %v1228_v13   ;;  %v714_v13 = vmax.f32 (!%p1012_p6), %v713_v12, 1.0  ;;  %v715_v15 = vld [vmem:[#allocation2] sm:$0x1] (!%p1012_p6) }
 0x1ec   : > { %1103 = vrcp.f32 %v714_v13 }
 0x1ee   : > { %813 = vperm.xlu1 %1102, %v1249_v17   ;;  %808 = vperm.xlu0 %1101, %v1244_v16   ;;  %v718_v17 = vld [vmem:[#allocation2 + $0x1] sm:$0x1] }
 0x1f2   : > { %823 = vperm.xlu1 %1102, %v1259_v19   ;;  %818 = vperm.xlu0 %1101, %v1254_v18  }
 0x1f6   : > { %833 = vperm.xlu1 %1102, %v1269_v21   ;;  %828 = vperm.xlu0 %1101, %v1264_v20   ;;  %v1104_v14 = vpop.eup %1103 }
 0x1f7   : > { %v717_v16 = vmul.f32 %v1104_v14, %v715_v15  ;;  %v719_v18 = vmul.f32 %v1104_v14, %v718_v17 }
 0x1f9   : > { %v720_v19 = vmul.f32 %v717_v16, %v717_v16 }
 0x1fa   : > { %843 = vperm.xlu1 %1102, %v1279_v23   ;;  %838 = vperm.xlu0 %1101, %v1274_v22   ;;  %v730_v23 = vlaneseq }
 0x1fb   : > { %v721_v20 = vsub.f32 %v719_v18, %v720_v19 }
 0x1fd   : > { %v722_v21 = vmax.f32 %v721_v20, 0.0 }
 0x1fe   : > { %853 = vperm.xlu1 %1102, %v1289_v25   ;;  %848 = vperm.xlu0 %1101, %v1284_v24   ;;  %v723_v24 = vld [vmem:[%s1583_s3] sm:$0x1] }
 0x1ff   : > { %v724_v22 = vadd.f32 1e-05, %v722_v21 }
 0x201   : > { %1105 = vrsqrt.f32 %v724_v22 }
 0x202   : > { %863 = vperm.xlu1 %1102, %v1299_v27   ;;  %858 = vperm.xlu0 %1101, %v1294_v26   ;;  %v731_v27 = vshrl.u32 %v730_v23, 7 }
 0x204   : > { %v732_v62 = vsub.s32 0, %v731_v27 }
 0x20b   : > { %v1106_v25 = vpop.eup %1105 }
 0x20c   : > { %v726_v26 = vmul.f32 %v1106_v25, %v723_v24 }
 0x20e   : > { %v728_v59 = vmul.f32 %v726_v26, %v717_v16  ;;  %v1455_v0 = vrot.slane %v726_v26, %v732_v62 }
 0x210   : > { %v729_v1 = vsub.f32 %v727_v49, %v728_v59  ;;  %v736_v4 = vmul.f32 %v1301_v28, %v1455_v0  ;;  %v734_v6 = vmul.f32 %v1455_v0, %v1305_v30  ;;  %v737_v50 = vmul.f32 %v1309_v32, %v1455_v0 }
 0x211   : > { %v735_v7 = vmul.f32 %v1455_v0, %v1313_v34  ;;  %v739_v58 = vmul.f32 %v1455_v0, %v1329_v42  ;;  %v738_v28 = vmul.f32 %v1455_v0, %v1321_v38  ;;  %v741_v34 = vmul.f32 %v1325_v40, %v1455_v0 }
 0x212   : > { %v1459_v2 = vrot.slane %v729_v1, %v732_v62  ;;  %v740_v42 = vmul.f32 %v1317_v36, %v1455_v0  ;;  %v743_v54 = vmul.f32 %v1455_v0, %v1315_v35  ;;  %v742_v52 = vmul.f32 %v1455_v0, %v1307_v31 }
 0x213   : > { %v745_v31 = vmul.f32 %v1311_v33, %v1455_v0  ;;  %v744_v13 = vmul.f32 %v1303_v29, %v1455_v0  ;;  %v747_v20 = vmul.f32 %v1455_v0, %v1331_v43  ;;  %v746_v21 = vmul.f32 %v1455_v0, %v1323_v39 }
 0x214   : > { %v756_v3 = vadd.f32 %v1459_v2, %v736_v4  ;;  %v754_v63 = vadd.f32 %v1459_v2, %v734_v6  ;;  %v757_v30 = vadd.f32 %v1459_v2, %v737_v50  ;;  %v755_v10 = vadd.f32 %v1459_v2, %v735_v7 }
 0x215   : > { %v759_v32 = vadd.f32 %v1459_v2, %v739_v58  ;;  %v758_v51 = vadd.f32 %v1459_v2, %v738_v28  ;;  %v761_v40 = vadd.f32 %v1459_v2, %v741_v34  ;;  %v760_v36 = vadd.f32 %v1459_v2, %v740_v42 }
 0x216   : > { %v772_v8 = vmax.f32 %v756_v3, 0.0  ;;  %v770_v9 = vmax.f32 %v754_v63, 0.0  ;;  %v773_v46 = vmax.f32 %v757_v30, 0.0  ;;  %v771_v47 = vmax.f32 %v755_v10, 0.0 }
 0x217   : > { %v775_v60 = vmax.f32 %v759_v32, 0.0  ;;  %v774_v56 = vmax.f32 %v758_v51, 0.0  ;;  %v777_v35 = vmax.f32 %v761_v40, 0.0  ;;  %v776_v12 = vmax.f32 %v760_v36, 0.0 }
 0x218   : > { %v763_v16 = vadd.f32 %v1459_v2, %v743_v54  ;;  %v762_v17 = vadd.f32 %v1459_v2, %v742_v52  ;;  %v765_v29 = vadd.f32 %v1459_v2, %v745_v31  ;;  %v764_v19 = vadd.f32 %v1459_v2, %v744_v13 }
 0x219   : > { %v767_v43 = vadd.f32 %v1459_v2, %v747_v20  ;;  %v766_v39 = vadd.f32 %v1459_v2, %v746_v21  ;;  %v749_v59 = vmul.f32 %v1327_v41, %v1455_v0  ;;  %v748_v62 = vmul.f32 %v1319_v37, %v1455_v0 }
 0x21a   : > { %v779_v25 = vmax.f32 %v763_v16, 0.0  ;;  %v778_v24 = vmax.f32 %v762_v17, 0.0  ;;  %v781_v4 = vmax.f32 %v765_v29, 0.0  ;;  %v780_v6 = vmax.f32 %v764_v19, 0.0 }
 0x21b   : > { %v783_v41 = vmax.f32 %v767_v43, 0.0  ;;  %v782_v50 = vmax.f32 %v766_v39, 0.0  ;;  %v769_v0 = vadd.f32 %v1459_v2, %v749_v59  ;;  %v768_v58 = vadd.f32 %v1459_v2, %v748_v62 }
 0x21d   : > { %v785_v10 = vmax.f32 %v769_v0, 0.0 }
 0x265   : > { %v799_v11 = vpop.permute.xlu1 %798  ;;  %v789_v5 = vpop.permute.xlu0 %788 }
 0x266   : > { %v868_v38 = vmul.f32 %v799_v11, %v772_v8  ;;  %v866_v44 = vmul.f32 %v789_v5, %v770_v9  ;;  %v784_v11 = vmax.f32 %v768_v58, 0.0 }
 0x268   : > { %885 = vst.msk [vmem:[%s1584_s4 + $0x10] sm:$0xff] %vm882_vm6, %v868_v38  ;;  %883 = vst.msk [vmem:[%s1584_s4] sm:$0xff] %vm882_vm6, %v866_v44 }
 0x269   : > { %v804_v53 = vpop.permute.xlu1 %803  ;;  %v794_v45 = vpop.permute.xlu0 %793 }
 0x26a   : > { %v869_v48 = vmul.f32 %v804_v53, %v773_v46  ;;  %v867_v55 = vmul.f32 %v794_v45, %v771_v47 }
 0x26c   : > { %886 = vst.msk [vmem:[%s1584_s4 + $0x18] sm:$0xff] %vm882_vm6, %v869_v48  ;;  %884 = vst.msk [vmem:[%s1584_s4 + $0x8] sm:$0xff] %vm882_vm6, %v867_v55 }
 0x26d   : > { %v814_v61 = vpop.permute.xlu1 %813  ;;  %v809_v57 = vpop.permute.xlu0 %808 }
 0x26e   : > { %v871_v14 = vmul.f32 %v814_v61, %v775_v60  ;;  %v870_v15 = vmul.f32 %v809_v57, %v774_v56 }
 0x270   : > { %888 = vst.msk [vmem:[%s1584_s4 + $0x28] sm:$0xff] %vm882_vm6, %v871_v14  ;;  %887 = vst.msk [vmem:[%s1584_s4 + $0x20] sm:$0xff] %vm882_vm6, %v870_v15 }
 0x271   : > { %v824_v33 = vpop.permute.xlu1 %823  ;;  %v819_v18 = vpop.permute.xlu0 %818 }
 0x272   : > { %v873_v22 = vmul.f32 %v824_v33, %v777_v35  ;;  %v872_v23 = vmul.f32 %v819_v18, %v776_v12 }
 0x274   : > { %890 = vst.msk [vmem:[%s1584_s4 + $0x38] sm:$0xff] %vm882_vm6, %v873_v22  ;;  %889 = vst.msk [vmem:[%s1584_s4 + $0x30] sm:$0xff] %vm882_vm6, %v872_v23 }
 0x275   : > { %v834_v26 = vpop.permute.xlu1 %833  ;;  %v829_v27 = vpop.permute.xlu0 %828 }
 0x276   : > { %v875_v49 = vmul.f32 %v834_v26, %v779_v25  ;;  %v874_v1 = vmul.f32 %v829_v27, %v778_v24 }
 0x278   : > { %892 = vst.msk [vmem:[%s1584_s4 + $0x48] sm:$0xff] %vm882_vm6, %v875_v49  ;;  %891 = vst.msk [vmem:[%s1584_s4 + $0x40] sm:$0xff] %vm882_vm6, %v874_v1 }
 0x279   : > { %v844_v3 = vpop.permute.xlu1 %843  ;;  %v839_v63 = vpop.permute.xlu0 %838 }
 0x27a   : > { %v877_v7 = vmul.f32 %v844_v3, %v781_v4  ;;  %v876_v37 = vmul.f32 %v839_v63, %v780_v6 }
 0x27c   : > { %894 = vst.msk [vmem:[%s1584_s4 + $0x58] sm:$0xff] %vm882_vm6, %v877_v7  ;;  %893 = vst.msk [vmem:[%s1584_s4 + $0x50] sm:$0xff] %vm882_vm6, %v876_v37 }
 0x27d   : > { %v854_v28 = vpop.permute.xlu1 %853  ;;  %v849_v8 = vpop.permute.xlu0 %848 }
 0x27e   : > { %v879_v9 = vmul.f32 %v854_v28, %v783_v41  ;;  %v878_v30 = vmul.f32 %v849_v8, %v782_v50 }
 0x280   : > { %896 = vst.msk [vmem:[%s1584_s4 + $0x68] sm:$0xff] %vm882_vm6, %v879_v9  ;;  %895 = vst.msk [vmem:[%s1584_s4 + $0x60] sm:$0xff] %vm882_vm6, %v878_v30 }
 0x281   : > { %v864_v2 = vpop.permute.xlu1 %863  ;;  %v859_v5 = vpop.permute.xlu0 %858 }
 0x282   : > { %v881_v32 = vmul.f32 %v864_v2, %v785_v10  ;;  %v880_v51 = vmul.f32 %v859_v5, %v784_v11 }
 0x284   : > { %898 = vst.msk [vmem:[%s1584_s4 + $0x78] sm:$0xff] %vm882_vm6, %v881_v32  ;;  %897 = vst.msk [vmem:[%s1584_s4 + $0x70] sm:$0xff] %vm882_vm6, %v880_v51 }
 0x285 PF: > { %s14_s17 = sadd.s32 1, %s1129_s17   ;;  %s1585_s15 = smov %s1125_s16 }
 0x286   : > { %p11_p7 = scmp.ge.s32.totalorder %s14_s17, 4   ;;  %s1586_s16 = smov %s1588_s18 }
 0x288   :  { %13 = sbr.rel (!%p11_p7) target bundleno = 2 (0x2), region = 81 }

// kernel: sparse_encoder_forward.3
= control target key start
LH: loop header
LB: loop body
LE: loop exit
PB: predicated region body
PF: predicated region fallthrough
CT: control target
= control target key end

     0   :  { %9 = vsyncpa [#allocation4], 0  ;;  %s950_s0 = inlined_call_operand.vmem [shape: bf16[32,72], index: 0, kind: input, shape index: {}]   ;;  %s951_s1 = inlined_call_operand.vmem [shape: bf16[72,16], index: 1, kind: input, shape index: {}]   ;;  %s952_s2 = inlined_call_operand.vmem [shape: f32[32,1], index: 2, kind: input, shape index: {}]   ;;  %s953_s3 = inlined_call_operand.vmem [shape: f32[2,16], index: 3, kind: input, shape index: {}]   ;;  %s954_s4 = inlined_call_operand.hbm [shape: f32[32,16], index: 4, kind: output, shape index: {}]  }
   0x1   :  { %11 = vsyncpa [#allocation4 + $0x1], 0  ;;  %s806_s15 = smov 0   ;;  %s808_s16 = smov 0  }
   0x2   :  { %s810_s17 = smov 0  }
   0x3 LB: > { %s618_s18 = sadd.s32 4294967295, %s773_s17   ;;  %s619_s19 = sadd.s32 4294967294, %s773_s17   ;;  %s773_s17 = sphi %s810_s17, %s17_s17   ;;  %s769_s16 = sphi %s808_s16, %s957_s16   ;;  %s765_s15 = sphi %s806_s15, %s956_s15  }
   0x4   : > { %s29_s20 = sadd.s32 1, %s769_s16  ;;  %p623_p0 = scmp.ge.s32.totalorder %s773_s17, 1 }
   0x5   : > { %p31_p1 = scmp.ge.s32.totalorder %s29_s20, 2  ;;  %p191_p2 = scmp.lt.s32.totalorder %s773_s17, 3 }
   0x7   : > { %s959_s20 = smov (%p31_p1, %s29_s20), 0  ;;  %p192_p3 = pnand %p623_p0, %p191_p2 }
   0x8   : > { %v706_v0 = vld [vmem:[%s951_s1] sm:$0xff] (!%p192_p3)   ;;  %v707_v1 = vld [vmem:[%s951_s1 + $0x8] sm:$0xff] (!%p192_p3)   ;;  %v708_v2 = vld [vmem:[%s951_s1 + $0x10] sm:$0xff] (!%p192_p3)   ;;  %vm287_vm0 = vcmask (!%p192_p3), 588800   ;;  %vm294_vm1 = vcmask (!%p192_p3), 1043456   ;;  %p351_p4 = scmp.eq.s32.totalorder (!%p192_p3), %s765_s15, 0 }
   0x9   : > { %195 = sbr.rel (%p192_p3) target bundleno = 623 (0x26f), region = 36  ;;  %648 = vmatprep.subr.bf16.mxu0 (!%p192_p3), %v706_v0  ;;  %v711_v3 = vld [vmem:[%s950_s0] sm:$0xff] (!%p192_p3)   ;;  %v709_v4 = vld [vmem:[%s951_s1 + $0x18] sm:$0xff] (!%p192_p3)   ;;  %v712_v7 = vld [vmem:[%s950_s0 + $0x8] sm:$0xff] (!%p192_p3)  }
   0xa   : > { %649 = vmatpush3.bf16.msra.mxu0 (!%p192_p3), %v706_v0  ;;  %658 = vmatprep.mubr.msk.bf16.mxu0 (!%p192_p3), %vm287_vm0, %v711_v3  ;;  %v710_v5 = vld [vmem:[%s951_s1 + $0x20] ss:$0 sps:$4 sm:$0xff] (!%p192_p3)   ;;  %v857_v9 = vld [vmem:[%s952_s2 + $0x8] sm:$0xff] (!%p192_p3)  ;;  %v862_v10 = vld [vmem:[%s952_s2 + $0x10] sm:$0xff] (!%p192_p3) }
   0xb   : > { %650 = vmatprep.subr.bf16.mxu0 (!%p192_p3), %v707_v1  ;;  %v296_v6 = vsel (!%p192_p3), %vm294_vm1, %v710_v5, 0  ;;  %v852_v8 = vld [vmem:[%s952_s2] sm:$0xff] (!%p192_p3)  ;;  %v868_v11 = vld [vmem:[%s952_s2 + $0x18] sm:$0xff] (!%p192_p3) }
   0xe   : > { %651 = vmatpush3.bf16.msra.mxu0 (!%p192_p3), %v707_v1 }
   0xf   : > { %652 = vmatprep.subr.bf16.mxu0 (!%p192_p3), %v708_v2 }
  0x10   : > { %vm357_vm2 = vcmask (%p351_p4), 130048   ;;  %v775_v16 = vmov (%p351_p4), 0.0  }
  0x11   : > { %358 = vst.msk [vmem:[#allocation2] sm:$0xff] (%p351_p4), %vm357_vm2, %v775_v16 }
  0x12   : > { %653 = vmatpush3.bf16.msra.mxu0 %v708_v2 }
  0x13   : > { %654 = vmatprep.subr.bf16.mxu0 %v709_v4 }
  0x16   : > { %655 = vmatpush3.bf16.msra.mxu0 %v709_v4 }
  0x17   : > { %662 = vmatprep.subr.msk.bf16.mxu0 %vm294_vm1, %v710_v5 }
  0x1a   : > { %657 = vmatpush3.bf16.msra.mxu0 %v296_v6 }
  0x1d   : > { %659 = vmatmul.mubr.msk.bf16.vlgmr.msra.gmra.mrb[0].mxu0 %vm287_vm0, %v712_v7 }
  0xed   : > { %356 = sbr.rel (!%p351_p4) target bundleno = 244 (0xf4), region = 40 }
  0xf0   : > { %v870_v12 = vpop.f32.mrb[0].mxu0 }
  0xf1   : > { %v872_v13 = vpop.f32.mrb[1].mxu0 }
  0xf2   : > { %v874_v14 = vpop.f32.mrb[2].mxu0 }
  0xf3   : > { %v876_v15 = vpop.f32.mrb[3].mxu0 }
  0xf4 PF: > { %p634_p5 = scmp.ne.s32.totalorder %s765_s15, 0 }
  0xf5   : > { %vm425_vm3 = vcmask (!%p634_p5), 7168   ;;  %v776_v20 = vmov (!%p634_p5), 0   ;;  %vm387_vm4 = vcmask (!%p634_p5), 130048   ;;  %v386_v3 = vld [vmem:[#allocation2] sm:$0x1] (!%p634_p5)  ;;  %vm402_vm5 = vcmask (!%p634_p5), 122880  }
  0xf6   : > { %361 = sbr.rel (%p634_p5) target bundleno = 461 (0x1cd), region = 44  ;;  %v426_v17 = vsel (!%p634_p5), %vm425_vm3, %v852_v8, 0.0  ;;  %v427_v18 = vsel (!%p634_p5), %vm425_vm3, %v857_v9, 0.0  ;;  %v429_v19 = vsel (!%p634_p5), %vm425_vm3, %v862_v10, 0.0  ;;  %714 = vset.pattern.permute.xlu1 (!%p634_p5), %v776_v20  ;;  %713 = vset.pattern.permute.xlu0 (!%p634_p5), %v776_v20  ;;  %v431_v22 = vsel (!%p634_p5), %vm425_vm3, %v868_v11, 0.0 }
  0xf7   : > { %v428_v21 = vadd.f32 (!%p634_p5), %v427_v18, %v426_v17  ;;  %369 = vperm.xlu1 (!%p634_p5), %714, %v857_v9   ;;  %v404_v6 = vld [vmem:[#allocation2 + $0x1] sm:$0x1] (!%p634_p5)  ;;  %v424_v18 = vld [vmem:[#allocation2 + $0x2] sm:$0x1] (!%p634_p5) }
  0xf9   : > { %v430_v23 = vadd.f32 (!%p634_p5), %v429_v19, %v428_v21 }
  0xfb   : > { %v432_v24 = vadd.f32 (!%p634_p5), %v431_v22, %v430_v23  ;;  %374 = vperm.xlu1 (!%p634_p5), %714, %v862_v10  }
  0xfd   : > { %433 = vadd.xlane.f32.xlu0 %v432_v24 }
  0xff   : > { %379 = vperm.xlu1 %714, %v868_v11  }
 0x113   : > { %364 = vperm.xlu0 %713, %v852_v8  }
 0x176   : > { %v370_v25 = vpop.permute.xlu1 %369 }
 0x177   : > { %v383_v29 = vmul.f32 %v370_v25, %v876_v15 }
 0x179   : > { %v406_v34 = vmul.f32 %v383_v29, %v383_v29  ;;  %v389_v39 = vsel %vm387_vm4, %v383_v29, 0.0 }
 0x17a   : > { %v375_v26 = vpop.permute.xlu1 %374 }
 0x17b   : > { %v384_v33 = vmul.f32 %v870_v12, %v375_v26  ;;  %v410_v42 = vsel %vm387_vm4, %v406_v34, 0.0 }
 0x17d   : > { %v407_v40 = vmul.f32 %v384_v33, %v384_v33  ;;  %v391_v43 = vsel %vm387_vm4, %v384_v33, 0.0 }
 0x17e   : > { %v380_v31 = vpop.permute.xlu1 %379 }
 0x17f   : > { %v385_v36 = vmul.f32 %v874_v14, %v380_v31  ;;  %v412_v49 = vsel %vm387_vm4, %v407_v40, 0.0 }
 0x181   : > { %v408_v47 = vmul.f32 %v385_v36, %v385_v36  ;;  %v393_v51 = vsel %vm387_vm4, %v385_v36, 0.0 }
 0x183   : > { %v414_v54 = vsel %vm387_vm4, %v408_v47, 0.0 }
 0x18a   : > { %v434_v27 = vpop.xlane.xlu0 %433 }
 0x18b   : > { %v435_v28 = vrot.slane %v434_v27, 4 }
 0x18d   : > { %v436_v30 = vadd.f32 %v435_v28, %v434_v27 }
 0x18f   : > { %v437_v32 = vrot.slane %v436_v30, 2 }
 0x191   : > { %v438_v35 = vadd.f32 %v437_v32, %v436_v30 }
 0x192   : > { %v365_v37 = vpop.permute.xlu0 %364 }
 0x193   : > { %v439_v38 = vrot.slane %v438_v35, 1  ;;  %v382_v41 = vmul.f32 %v365_v37, %v872_v13 }
 0x195   : > { %v440_v44 = vadd.f32 %v439_v38, %v438_v35  ;;  %v388_v45 = vsel %vm387_vm4, %v382_v41, 0.0  ;;  %v405_v46 = vmul.f32 %v382_v41, %v382_v41 }
 0x196   : > { %v390_v48 = vadd.f32 %v389_v39, %v388_v45 }
 0x197   : > { %663 = vpush %v440_v44  ;;  %v409_v50 = vsel %vm387_vm4, %v405_v46, 0.0 }
 0x198   : > { %v411_v52 = vadd.f32 %v410_v42, %v409_v50  ;;  %v392_v53 = vadd.f32 %v391_v43, %v390_v48 }
 0x19a   : > { %v394_v55 = vadd.f32 %v393_v51, %v392_v53  ;;  %v413_v56 = vadd.f32 %v412_v49, %v411_v52 }
 0x19c   : > { %v395_v57 = vrot.slane %v394_v55, 4  ;;  %v415_v58 = vadd.f32 %v414_v54, %v413_v56 }
 0x19e   : > { %v396_v59 = vadd.f32 %v395_v57, %v394_v55  ;;  %v416_v60 = vrot.slane %v415_v58, 4 }
 0x1a0   : > { %v397_v61 = vrot.slane %v396_v59, 2  ;;  %v417_v62 = vadd.f32 %v416_v60, %v415_v58 }
 0x1a2   : > { %v398_v63 = vadd.f32 %v397_v61, %v396_v59  ;;  %v418_v0 = vrot.slane %v417_v62, 2 }
 0x1a4   : > { %v399_v1 = vrot.slane %v398_v63, 1  ;;  %v419_v2 = vadd.f32 %v418_v0, %v417_v62 }
 0x1a6   : > { %v400_v4 = vadd.f32 %v399_v1, %v398_v63  ;;  %v420_v5 = vrot.slane %v419_v2, 1 }
 0x1a8   : > { %v401_v7 = vadd.f32 %v400_v4, %v386_v3  ;;  %v421_v16 = vadd.f32 %v420_v5, %v419_v2 }
 0x1aa   : > { %403 = vst.msk [vmem:[#allocation2] sm:$0x1] %vm402_vm5, %v401_v7  ;;  %v422_v17 = vadd.f32 %v421_v16, %v404_v6 }
 0x1ac   : > { %423 = vst.msk [vmem:[#allocation2 + $0x1] sm:$0x1] %vm402_vm5, %v422_v17 }
 0x1c8   : > { %s664_s23 = spop %663 }
 0x1c9   : > { %v442_v19 = vstv %s664_s23 }
 0x1ca   : > { %v443_v20 = vadd.f32 %v442_v19, %v424_v18 }
 0x1cc   : > { %444 = vst.msk [vmem:[#allocation2 + $0x2] sm:$0x1] %vm402_vm5, %v443_v20 }
 0x1cd PF: > { %p635_p6 = scmp.ne.s32.totalorder %s765_s15, 1 }
 0x1ce   : > { %v777_v21 = vmov (!%p635_p6), 0   ;;  %v451_v25 = vld [vmem:[#allocation2] sm:$0x1] (!%p635_p6)  ;;  %v454_v27 = vld [vmem:[#allocation2 + $0x1] sm:$0x1] (!%p635_p6)  ;;  %vm510_vm6 = vcmask (!%p635_p6), 130048  }
 0x1cf   : > { %448 = sbr.rel (%p635_p6) target bundleno = 599 (0x257), region = 48  ;;  %716 = vset.pattern.permute.xlu1 (!%p635_p6), %v777_v21  ;;  %715 = vset.pattern.permute.xlu0 (!%p635_p6), %v777_v21  ;;  %v463_v36 = vld [vmem:[%s953_s3 + $0x1] sm:$0x1] (!%p635_p6) }
 0x1d0   : > { %498 = vperm.xlu1 (!%p635_p6), %716, %v862_v10   ;;  %488 = vperm.xlu0 (!%p635_p6), %715, %v852_v8   ;;  %v466_v10 = vlaneseq (!%p635_p6)  ;;  %v459_v8 = vld [vmem:[%s953_s3] sm:$0x1] (!%p635_p6) }
 0x1d3   : > { %v449_v22 = vld [vmem:[#allocation2 + $0x2] sm:$0x1] (!%p635_p6) }
 0x1d4   : > { %503 = vperm.xlu1 (!%p635_p6), %716, %v868_v11   ;;  %493 = vperm.xlu0 (!%p635_p6), %715, %v857_v9   ;;  %v450_v23 = vmax.f32 (!%p635_p6), %v449_v22, 1.0  ;;  %v467_v11 = vshrl.u32 (!%p635_p6), %v466_v10, 7 }
 0x1d6   : > { %717 = vrcp.f32 %v450_v23  ;;  %v468_v35 = vsub.s32 0, %v467_v11 }
 0x1e0   : > { %v718_v24 = vpop.eup %717 }
 0x1e1   : > { %v453_v26 = vmul.f32 %v718_v24, %v451_v25  ;;  %v455_v28 = vmul.f32 %v718_v24, %v454_v27 }
 0x1e3   : > { %v456_v29 = vmul.f32 %v453_v26, %v453_v26 }
 0x1e5   : > { %v457_v30 = vsub.f32 %v455_v28, %v456_v29 }
 0x1e7   : > { %v458_v31 = vmax.f32 %v457_v30, 0.0 }
 0x1e9   : > { %v460_v32 = vadd.f32 1e-05, %v458_v31 }
 0x1eb   : > { %719 = vrsqrt.f32 %v460_v32 }
 0x1f5   : > { %v720_v33 = vpop.eup %719 }
 0x1f6   : > { %v462_v9 = vmul.f32 %v720_v33, %v459_v8 }
 0x1f8   : > { %v464_v34 = vmul.f32 %v462_v9, %v453_v26  ;;  %v469_v38 = vrot.slane %v462_v9, %v468_v35 }
 0x1fa   : > { %v465_v37 = vsub.f32 %v463_v36, %v464_v34  ;;  %v472_v39 = vmul.f32 %v870_v12, %v469_v38  ;;  %v470_v41 = vmul.f32 %v469_v38, %v872_v13  ;;  %v473_v44 = vmul.f32 %v874_v14, %v469_v38 }
 0x1fb   : > { %v471_v45 = vmul.f32 %v469_v38, %v876_v15 }
 0x1fc   : > { %v477_v40 = vrot.slane %v465_v37, %v468_v35 }
 0x1fe   : > { %v480_v42 = vadd.f32 %v477_v40, %v472_v39  ;;  %v478_v43 = vadd.f32 %v477_v40, %v470_v41  ;;  %v481_v48 = vadd.f32 %v477_v40, %v473_v44  ;;  %v479_v49 = vadd.f32 %v477_v40, %v471_v45 }
 0x200   : > { %v484_v46 = vmax.f32 %v480_v42, 0.0  ;;  %v482_v47 = vmax.f32 %v478_v43, 0.0  ;;  %v485_v54 = vmax.f32 %v481_v48, 0.0  ;;  %v483_v12 = vmax.f32 %v479_v49, 0.0 }
 0x24f   : > { %v499_v50 = vpop.permute.xlu1 %498  ;;  %v489_v51 = vpop.permute.xlu0 %488 }
 0x250   : > { %v508_v52 = vmul.f32 %v499_v50, %v484_v46  ;;  %v506_v53 = vmul.f32 %v489_v51, %v482_v47 }
 0x252   : > { %513 = vst.msk [vmem:[#allocation3 + $0x10] sm:$0xff] %vm510_vm6, %v508_v52  ;;  %511 = vst.msk [vmem:[#allocation3] sm:$0xff] %vm510_vm6, %v506_v53 }
 0x253   : > { %v504_v13 = vpop.permute.xlu1 %503  ;;  %v494_v55 = vpop.permute.xlu0 %493 }
 0x254   : > { %v509_v56 = vmul.f32 %v504_v13, %v485_v54  ;;  %v507_v57 = vmul.f32 %v494_v55, %v483_v12 }
 0x256   : > { %514 = vst.msk [vmem:[#allocation3 + $0x18] sm:$0xff] %vm510_vm6, %v509_v56  ;;  %512 = vst.msk [vmem:[#allocation3 + $0x8] sm:$0xff] %vm510_vm6, %v507_v57 }
 0x257 PF: > { %p916_p7 = scmp.eq.s32.totalorder %s618_s18, 1  ;;  %s778_s28 = smov [#allocation3]  }
 0x258   : > { %s530_s29 = sshll.u32 %s778_s28, 4  ;;  %s531_s29 = int_to_ptr.vmem [resolvable:$true] %s530_s29 }
 0x259   : > { %s721_s30 = scalar_lea.vmem %s531_s29, 512  ;;  %s727_s5 = scalar_lea.vmem %s531_s29, 1024 }
 0x25a   : > { %p722_p8 = scmp.ne.s32.totalorder %s531_s29, %s721_s30  ;;  %p728_p11 = scmp.lt.s32.totalorder %s531_s29, %s531_s29 }
 0x25b   : > { %p729_p12 = scmp.lt.s32.totalorder %s727_s5, %s721_s30 }
 0x25c   : > { %p723_p9 = pnand %p722_p8, %p916_p7 }
 0x25d   : > { %p730_p13 = por %p729_p12, %p728_p11 }
 0x25e   : > { %p724_p10 = pneg %p723_p9 }
 0x260   : > { %p731_p0 = pnand %p730_p13, %p724_p10 }
 0x262   : > { %734 = shalt.err (!%p731_p0)
}
 0x263   : > { %s735_s7 = scalar_lea.hbm %s954_s4, 512 }
 0x264   : > { %p736_p1 = scmp.ne.s32.totalorder %s954_s4, %s735_s7  ;;  %p741_p4 = scmp.lt.u32.totalorder %s735_s7, %s954_s4 }
 0x266   : > { %p737_p2 = pnand %p736_p1, %p916_p7 }
 0x268   : > { %p738_p3 = pneg %p737_p2 }
 0x26a   : > { %p743_p5 = pnand %p741_p4, %p738_p3 }
 0x26c   : > { %746 = shalt.err (!%p743_p5)
}
 0x26d   : > { %s779_s12 = smov 128   ;;  %s780_s13 = smov 8  }
 0x26e   : > { %666 = dma.vmem_to_hbm [thread:$0]  (%p916_p7), %s531_s29, 512, %s954_s4, [#allocation4], %s779_s12, %s779_s12, %s780_s13  }
 0x26f PF: > { %p674_p6 = scmp.ge.s32.totalorder %s773_s17, 2  ;;  %p675_p8 = scmp.eq.s32.totalorder %s619_s19, 1 }
 0x271   : > { %p670_p9 = pnand %p675_p8, %p674_p6 }
 0x273   : > { %760 = dma.done.wait (!%p670_p9), [#allocation4], 512  }
 0x274   : > { %762 = vsyncadd (!%p670_p9), [#allocation4], 4294966784  ;;  %s17_s17 = sadd.s32 1, %s773_s17   ;;  %s956_s15 = smov %s769_s16 }
 0x275   : > { %p14_p10 = scmp.ge.s32.totalorder %s17_s17, 4   ;;  %s957_s16 = smov %s959_s20 }
 0x277   :  { %16 = sbr.rel (!%p14_p10) target bundleno = 3 (0x3), region = 86 }
 0x27e   :  { %551 = vsyncpa [#allocation4], 1 }
 0x27f   :  { %553 = vsyncpa [#allocation4 + $0x1], 1 }

</bundles_post_ra>
